<compile_context>
chip_gen: v6e
topology: v6e:2x2x1
jax: 0.10.0
libtpu: 0.0.40
codegen_flags: <defaults>
</compile_context>

<pallas_src>
import functools
import math

import jax
import jax.numpy as jnp
from jax.experimental import pallas as pl
from jax.experimental.pallas import tpu as pltpu

EPS = 1e-8
KH = KW = 7
STRIDE = 2
PAD = 3
OUT_CH = 64
NPAD = 128   # lane-dense padded output-channel width


# ----------------------------------------------------------------------------
# Fused kernel: log + 16 shifted MXU matmuls (f32 accumulate) + bias.
# ----------------------------------------------------------------------------
def _fused_kernel(x_ref, w_ref, b_ref, o_ref, *, nb, cin, ho, wo):
    # x_ref: (nb, Hh, Wh, 4*cin) raw spec, spatially padded with the value whose
    #        log equals the affine zero point, stride-2 parity packed into the
    #        channel dim: x[b, hh, wh, (p*2+q)*cin + c] = xpad[b, c, 2*hh+p, 2*wh+q]
    # w_ref: (16, 4*cin, NPAD) bf16 shift-group weights (norm scale folded in,
    #        out-of-range taps zeroed).
    # b_ref: (ho*wo, NPAD) f32 CoordConv contribution + norm-offset constant.
    g4c = 4 * cin

    # Elementwise phase: only the EUP log remains (norm affine folded into w/b).
    x = jnp.log(x_ref[...] + EPS).astype(jnp.bfloat16)

    # Conv as a sum of 16 shifted matmuls — no im2col scratch.  Static (dh, dw)
    # offsets keep every slice a static sublane window; 16 unrolled iterations
    # keep the traced program small.
    acc = jnp.zeros((nb * ho * wo, NPAD), jnp.float32)
    for dh in range(4):
        for dw in range(4):
            g = dh * 4 + dw
            xs = x[:, dh:dh + ho, dw:dw + wo, :].reshape(nb * ho * wo, g4c)
            acc = acc + jnp.dot(xs, w_ref[g],
                                preferred_element_type=jnp.float32)

    # Lane-dense (128-wide) store; bias broadcasts over the nb batch rows.
    o_ref[...] = acc.reshape(nb, ho * wo, NPAD) + b_ref[...]


# ----------------------------------------------------------------------------
# ForceSpecEncoder forward.
# ----------------------------------------------------------------------------
def force_spec_encoder(spec, conv_w, *, is_norm, nmin, nmax):
    B, Cin, H, W = spec.shape
    O, CI, kh_, kw_ = conv_w.shape                     # (64, 8, 7, 7)
    assert (O, CI, kh_, kw_) == (OUT_CH, Cin + 2, KH, KW)
    Ho = (H + 2 * PAD - KH) // STRIDE + 1
    Wo = (W + 2 * PAD - KW) // STRIDE + 1

    # Affine fold of normalization: x_norm = a * log(x+EPS) + b (exact, conv is
    # linear, so a goes into the weights and b into the bias).
    if is_norm:
        a = 2.0 / (nmax - nmin)
        b = -2.0 * nmin / (nmax - nmin) - 1.0
    else:
        a, b = 1.0, 0.0

    # Conv zero-padding happens AFTER log/norm in the module; pad the RAW spec
    # with the value whose log is the affine zero point t = -b/a, so padded
    # taps contribute (a*w)*t + b*w = 0 exactly like zero padding.
    t = -b / a
    pad_val = math.exp(t) - EPS
    if not math.isfinite(pad_val):
        raise ValueError("normalization midpoint too large; padding value "
                         "overflows float32 — cannot fold padding into raw spec")

    # ---- 1x-data layout prep (plain JAX; no patch expansion) ----------------
    Hp, Wp = H + 2 * PAD, W + 2 * PAD
    Hp_e, Wp_e = Hp + (Hp % 2), Wp + (Wp % 2)          # even for parity split
    xpad = jnp.pad(
        spec,
        ((0, 0), (0, 0), (PAD, PAD + (Hp_e - Hp)), (PAD, PAD + (Wp_e - Wp))),
        constant_values=pad_val)
    Hh, Wh = Hp_e // 2, Wp_e // 2
    # NCHW -> parity-packed NHWC: x_par[b,hh,wh,(p*2+q)*Cin+c] = xpad[b,c,2hh+p,2wh+q]
    x_par = xpad.reshape(B, Cin, Hh, 2, Wh, 2)
    x_par = x_par.transpose(0, 2, 4, 3, 5, 1).reshape(B, Hh, Wh, 4 * Cin)

    # Shift-group weights: w_grp[dh*4+dw, (p*2+q)*Cin+c, o] = a*w[o,c,2dh+p,2dw+q]
    # (zero for 2dh+p >= 7 or 2dw+q >= 7); scaled in f32, then bf16 for the MXU.
    w_spec = (conv_w[:, :Cin].astype(jnp.float32)) * a          # (O, Cin, 7, 7)
    w8 = jnp.pad(w_spec, ((0, 0), (0, 0), (0, 1), (0, 1)))       # (O, Cin, 8, 8)
    w_grp = w8.reshape(O, Cin, 4, 2, 4, 2).transpose(2, 4, 3, 5, 1, 0)
    w_grp = w_grp.reshape(16, 4 * Cin, O)
    w_grp = jnp.pad(w_grp, ((0, 0), (0, 0), (0, NPAD - O))).astype(jnp.bfloat16)

    # Input-independent bias: CoordConv channels (constant maps) convolved with
    # their weights, plus the normalization offset constant b * sum_taps(w).
    lin_h = jnp.linspace(-1.0, 1.0, H, dtype=spec.dtype)
    lin_w = jnp.linspace(-1.0, 1.0, W, dtype=spec.dtype)
    maps = jnp.stack([jnp.broadcast_to(lin_h[:, None], (H, W)),
                      jnp.broadcast_to(lin_w[None, :], (H, W))], axis=0)[None]
    coord_bias = jax.lax.conv_general_dilated(
        maps, conv_w[:, Cin:], window_strides=(STRIDE, STRIDE),
        padding=((PAD, PAD), (PAD, PAD)),
        dimension_numbers=("NCHW", "OIHW", "NCHW"),
        precision=jax.lax.Precision.HIGHEST)           # (1, O, Ho, Wo)
    bias_mat = coord_bias.reshape(O, Ho * Wo).T        # (Ho*Wo, O)
    bias_mat = bias_mat + b * jnp.sum(conv_w[:, :Cin], axis=(1, 2, 3))[None, :]
    bias_mat = jnp.pad(bias_mat, ((0, 0), (0, NPAD - O))).astype(jnp.float32)

    # Batch grouping: fatter matmul M for single-TC parts (v5e/v6e), while
    # keeping >= 2 grid steps so both v7x TensorCores get work.
    nb = next((g for g in (4, 2, 1) if B % g == 0 and B // g >= 2), 1)

    kernel = functools.partial(_fused_kernel, nb=nb, cin=Cin, ho=Ho, wo=Wo)
    out = pl.pallas_call(
        kernel,
        out_shape=jax.ShapeDtypeStruct((B, Ho * Wo, NPAD), jnp.float32),
        grid=(B // nb,),
        in_specs=[
            pl.BlockSpec((nb, Hh, Wh, 4 * Cin), lambda i: (i, 0, 0, 0)),
            pl.BlockSpec((16, 4 * Cin, NPAD), lambda i: (0, 0, 0)),   # weights: DMA once
            pl.BlockSpec((Ho * Wo, NPAD), lambda i: (0, 0)),          # bias: DMA once
        ],
        out_specs=pl.BlockSpec((nb, Ho * Wo, NPAD), lambda i: (i, 0, 0)),
        compiler_params=pltpu.CompilerParams(dimension_semantics=("parallel",)),
    )(x_par, w_grp, bias_mat)

    # TODO(synk): emit NHWC / bf16 directly if the (unspecified) backbone tail
    # consumes it; this final permute touches only the 1x conv output.
    out = out[:, :, :O].transpose(0, 2, 1).reshape(B, O, Ho, Wo)
    return out


# ----------------------------------------------------------------------------
# Pure-JAX reference (for correctness check).
# ----------------------------------------------------------------------------
def reference(spec, conv_w, *, is_norm, nmin, nmax):
    x = jnp.log(spec + EPS)
    if is_norm:
        x = (x - nmin) / (nmax - nmin)
        x = x * 2.0 - 1.0
    B, C, H, W = x.shape
    lin_h = jnp.linspace(-1.0, 1.0, H, dtype=x.dtype)[:, None] * jnp.ones((1, W), x.dtype)
    lin_w = jnp.linspace(-1.0, 1.0, W, dtype=x.dtype)[None, :] * jnp.ones((H, 1), x.dtype)
    maps = jnp.broadcast_to(jnp.stack([lin_h, lin_w], axis=0)[None], (B, 2, H, W))
    x = jnp.concatenate([x, maps], axis=1)
    return jax.lax.conv_general_dilated(
        x, conv_w, window_strides=(2, 2), padding=((3, 3), (3, 3)),
        dimension_numbers=("NCHW", "OIHW", "NCHW"),
        precision=jax.lax.Precision.HIGHEST)


if __name__ == "__main__":
    key = jax.random.PRNGKey(0)
    k_spec, k_w = jax.random.split(key)

    B, C, H, W = 2, 6, 16, 16           # spec has 6 channels; +2 coord -> 8
    spec = jax.random.uniform(k_spec, (B, C, H, W), jnp.float32,
                              minval=0.05, maxval=1.0)
    conv_w = jax.random.normal(k_w, (64, 8, 7, 7), jnp.float32) * 0.05

    # norm_spec (deterministic synthetic config)
    IS_NORM, NMIN, NMAX = True, -5.0, 1.0

    out = force_spec_encoder(spec, conv_w, is_norm=IS_NORM, nmin=NMIN, nmax=NMAX)
    out = jax.block_until_ready(out)

    ref = reference(spec, conv_w, is_norm=IS_NORM, nmin=NMIN, nmax=NMAX)
    assert out.shape == ref.shape == (B, 64, H // 2, W // 2), (out.shape, ref.shape)
    max_err = float(jnp.max(jnp.abs(out - ref)))
    # bf16 MXU inputs with f32 accumulation -> relaxed tolerance vs HIGHEST ref.
    if not jnp.allclose(out, ref, rtol=2e-2, atol=2e-2):
        raise AssertionError(f"Pallas output mismatch vs reference conv "
                             f"(max abs err {max_err})")
    print("KERNEL_OK")
</pallas_src>

<mosaic_0001>
module attributes {stable_mosaic.version = 11 : i64} {
  func.func @_fused_kernel(%arg0: i32, %arg1: memref<1x11x11x24xf32, #tpu.memory_space<vmem>>, %arg2: memref<16x24x128xbf16, #tpu.memory_space<vmem>>, %arg3: memref<64x128xf32, #tpu.memory_space<vmem>>, %arg4: memref<1x64x128xf32, #tpu.memory_space<vmem>>) attributes {dimension_semantics = [#tpu.dimension_semantics<parallel>], iteration_bounds = array<i64: 2>, scalar_prefetch = 0 : i64, scratch_operands = 0 : i64, tpu.core_type = #tpu.core_type<tc>, window_params = [{transform_indices = @transform_0, window_bounds = array<i64: 1, 11, 11, 24>}, {pipeline_mode = #tpu.pipeline_mode<synchronous>, transform_indices = @transform_1, window_bounds = array<i64: 16, 24, 128>}, {pipeline_mode = #tpu.pipeline_mode<synchronous>, transform_indices = @transform_2, window_bounds = array<i64: 64, 128>}, {transform_indices = @transform_3, window_bounds = array<i64: 1, 64, 128>}]} {
    %c0 = arith.constant 0 : index
    %c0_0 = arith.constant 0 : index
    %c0_1 = arith.constant 0 : index
    %c0_2 = arith.constant 0 : index
    %0 = vector.load %arg1[%c0, %c0_0, %c0_1, %c0_2] : memref<1x11x11x24xf32, #tpu.memory_space<vmem>>, vector<1x11x11x24xf32>
    %cst = arith.constant 9.99999993E-9 : f32
    %1 = vector.broadcast %cst : f32 to vector<1x11x11x24xf32>
    %2 = arith.addf %0, %1 : vector<1x11x11x24xf32>
    %3 = math.log %2 : vector<1x11x11x24xf32>
    %4 = arith.truncf %3 : vector<1x11x11x24xf32> to vector<1x11x11x24xbf16>
    %cst_3 = arith.constant 0.000000e+00 : f32
    %5 = vector.broadcast %cst_3 : f32 to vector<64x128xf32>
    %6 = vector.extract_strided_slice %4 {offsets = [0, 0, 0, 0], sizes = [1, 8, 8, 24], strides = [1, 1, 1, 1]} : vector<1x11x11x24xbf16> to vector<1x8x8x24xbf16>
    %7 = vector.shape_cast %6 : vector<1x8x8x24xbf16> to vector<64x24xbf16>
    %c0_4 = arith.constant 0 : index
    %c0_5 = arith.constant 0 : index
    %c0_6 = arith.constant 0 : index
    %8 = vector.load %arg2[%c0_4, %c0_5, %c0_6] : memref<16x24x128xbf16, #tpu.memory_space<vmem>>, vector<1x24x128xbf16>
    %9 = vector.shape_cast %8 : vector<1x24x128xbf16> to vector<24x128xbf16>
    %cst_7 = arith.constant dense<0.000000e+00> : vector<64x128xf32>
    %10 = tpu.matmul %7, %9, %cst_7 {dimension_numbers = #tpu.dot_dimension_numbers<[1], [0], [0], [1], [0, 0, 1, 1], [], []>} : vector<64x24xbf16>, vector<24x128xbf16>, vector<64x128xf32> -> vector<64x128xf32>
    %11 = arith.addf %5, %10 : vector<64x128xf32>
    %12 = vector.extract_strided_slice %4 {offsets = [0, 0, 1, 0], sizes = [1, 8, 8, 24], strides = [1, 1, 1, 1]} : vector<1x11x11x24xbf16> to vector<1x8x8x24xbf16>
    %13 = vector.shape_cast %12 : vector<1x8x8x24xbf16> to vector<64x24xbf16>
    %c1 = arith.constant 1 : index
    %c0_8 = arith.constant 0 : index
    %c0_9 = arith.constant 0 : index
    %14 = vector.load %arg2[%c1, %c0_8, %c0_9] : memref<16x24x128xbf16, #tpu.memory_space<vmem>>, vector<1x24x128xbf16>
    %15 = vector.shape_cast %14 : vector<1x24x128xbf16> to vector<24x128xbf16>
    %cst_10 = arith.constant dense<0.000000e+00> : vector<64x128xf32>
    %16 = tpu.matmul %13, %15, %cst_10 {dimension_numbers = #tpu.dot_dimension_numbers<[1], [0], [0], [1], [0, 0, 1, 1], [], []>} : vector<64x24xbf16>, vector<24x128xbf16>, vector<64x128xf32> -> vector<64x128xf32>
    %17 = arith.addf %11, %16 : vector<64x128xf32>
    %18 = vector.extract_strided_slice %4 {offsets = [0, 0, 2, 0], sizes = [1, 8, 8, 24], strides = [1, 1, 1, 1]} : vector<1x11x11x24xbf16> to vector<1x8x8x24xbf16>
    %19 = vector.shape_cast %18 : vector<1x8x8x24xbf16> to vector<64x24xbf16>
    %c2 = arith.constant 2 : index
    %c0_11 = arith.constant 0 : index
    %c0_12 = arith.constant 0 : index
    %20 = vector.load %arg2[%c2, %c0_11, %c0_12] : memref<16x24x128xbf16, #tpu.memory_space<vmem>>, vector<1x24x128xbf16>
    %21 = vector.shape_cast %20 : vector<1x24x128xbf16> to vector<24x128xbf16>
    %cst_13 = arith.constant dense<0.000000e+00> : vector<64x128xf32>
    %22 = tpu.matmul %19, %21, %cst_13 {dimension_numbers = #tpu.dot_dimension_numbers<[1], [0], [0], [1], [0, 0, 1, 1], [], []>} : vector<64x24xbf16>, vector<24x128xbf16>, vector<64x128xf32> -> vector<64x128xf32>
    %23 = arith.addf %17, %22 : vector<64x128xf32>
    %24 = vector.extract_strided_slice %4 {offsets = [0, 0, 3, 0], sizes = [1, 8, 8, 24], strides = [1, 1, 1, 1]} : vector<1x11x11x24xbf16> to vector<1x8x8x24xbf16>
    %25 = vector.shape_cast %24 : vector<1x8x8x24xbf16> to vector<64x24xbf16>
    %c3 = arith.constant 3 : index
    %c0_14 = arith.constant 0 : index
    %c0_15 = arith.constant 0 : index
    %26 = vector.load %arg2[%c3, %c0_14, %c0_15] : memref<16x24x128xbf16, #tpu.memory_space<vmem>>, vector<1x24x128xbf16>
    %27 = vector.shape_cast %26 : vector<1x24x128xbf16> to vector<24x128xbf16>
    %cst_16 = arith.constant dense<0.000000e+00> : vector<64x128xf32>
    %28 = tpu.matmul %25, %27, %cst_16 {dimension_numbers = #tpu.dot_dimension_numbers<[1], [0], [0], [1], [0, 0, 1, 1], [], []>} : vector<64x24xbf16>, vector<24x128xbf16>, vector<64x128xf32> -> vector<64x128xf32>
    %29 = arith.addf %23, %28 : vector<64x128xf32>
    %30 = vector.extract_strided_slice %4 {offsets = [0, 1, 0, 0], sizes = [1, 8, 8, 24], strides = [1, 1, 1, 1]} : vector<1x11x11x24xbf16> to vector<1x8x8x24xbf16>
    %31 = vector.shape_cast %30 : vector<1x8x8x24xbf16> to vector<64x24xbf16>
    %c4 = arith.constant 4 : index
    %c0_17 = arith.constant 0 : index
    %c0_18 = arith.constant 0 : index
    %32 = vector.load %arg2[%c4, %c0_17, %c0_18] : memref<16x24x128xbf16, #tpu.memory_space<vmem>>, vector<1x24x128xbf16>
    %33 = vector.shape_cast %32 : vector<1x24x128xbf16> to vector<24x128xbf16>
    %cst_19 = arith.constant dense<0.000000e+00> : vector<64x128xf32>
    %34 = tpu.matmul %31, %33, %cst_19 {dimension_numbers = #tpu.dot_dimension_numbers<[1], [0], [0], [1], [0, 0, 1, 1], [], []>} : vector<64x24xbf16>, vector<24x128xbf16>, vector<64x128xf32> -> vector<64x128xf32>
    %35 = arith.addf %29, %34 : vector<64x128xf32>
    %36 = vector.extract_strided_slice %4 {offsets = [0, 1, 1, 0], sizes = [1, 8, 8, 24], strides = [1, 1, 1, 1]} : vector<1x11x11x24xbf16> to vector<1x8x8x24xbf16>
    %37 = vector.shape_cast %36 : vector<1x8x8x24xbf16> to vector<64x24xbf16>
    %c5 = arith.constant 5 : index
    %c0_20 = arith.constant 0 : index
    %c0_21 = arith.constant 0 : index
    %38 = vector.load %arg2[%c5, %c0_20, %c0_21] : memref<16x24x128xbf16, #tpu.memory_space<vmem>>, vector<1x24x128xbf16>
    %39 = vector.shape_cast %38 : vector<1x24x128xbf16> to vector<24x128xbf16>
    %cst_22 = arith.constant dense<0.000000e+00> : vector<64x128xf32>
    %40 = tpu.matmul %37, %39, %cst_22 {dimension_numbers = #tpu.dot_dimension_numbers<[1], [0], [0], [1], [0, 0, 1, 1], [], []>} : vector<64x24xbf16>, vector<24x128xbf16>, vector<64x128xf32> -> vector<64x128xf32>
    %41 = arith.addf %35, %40 : vector<64x128xf32>
    %42 = vector.extract_strided_slice %4 {offsets = [0, 1, 2, 0], sizes = [1, 8, 8, 24], strides = [1, 1, 1, 1]} : vector<1x11x11x24xbf16> to vector<1x8x8x24xbf16>
    %43 = vector.shape_cast %42 : vector<1x8x8x24xbf16> to vector<64x24xbf16>
    %c6 = arith.constant 6 : index
    %c0_23 = arith.constant 0 : index
    %c0_24 = arith.constant 0 : index
    %44 = vector.load %arg2[%c6, %c0_23, %c0_24] : memref<16x24x128xbf16, #tpu.memory_space<vmem>>, vector<1x24x128xbf16>
    %45 = vector.shape_cast %44 : vector<1x24x128xbf16> to vector<24x128xbf16>
    %cst_25 = arith.constant dense<0.000000e+00> : vector<64x128xf32>
    %46 = tpu.matmul %43, %45, %cst_25 {dimension_numbers = #tpu.dot_dimension_numbers<[1], [0], [0], [1], [0, 0, 1, 1], [], []>} : vector<64x24xbf16>, vector<24x128xbf16>, vector<64x128xf32> -> vector<64x128xf32>
    %47 = arith.addf %41, %46 : vector<64x128xf32>
    %48 = vector.extract_strided_slice %4 {offsets = [0, 1, 3, 0], sizes = [1, 8, 8, 24], strides = [1, 1, 1, 1]} : vector<1x11x11x24xbf16> to vector<1x8x8x24xbf16>
    %49 = vector.shape_cast %48 : vector<1x8x8x24xbf16> to vector<64x24xbf16>
    %c7 = arith.constant 7 : index
    %c0_26 = arith.constant 0 : index
    %c0_27 = arith.constant 0 : index
    %50 = vector.load %arg2[%c7, %c0_26, %c0_27] : memref<16x24x128xbf16, #tpu.memory_space<vmem>>, vector<1x24x128xbf16>
    %51 = vector.shape_cast %50 : vector<1x24x128xbf16> to vector<24x128xbf16>
    %cst_28 = arith.constant dense<0.000000e+00> : vector<64x128xf32>
    %52 = tpu.matmul %49, %51, %cst_28 {dimension_numbers = #tpu.dot_dimension_numbers<[1], [0], [0], [1], [0, 0, 1, 1], [], []>} : vector<64x24xbf16>, vector<24x128xbf16>, vector<64x128xf32> -> vector<64x128xf32>
    %53 = arith.addf %47, %52 : vector<64x128xf32>
    %54 = vector.extract_strided_slice %4 {offsets = [0, 2, 0, 0], sizes = [1, 8, 8, 24], strides = [1, 1, 1, 1]} : vector<1x11x11x24xbf16> to vector<1x8x8x24xbf16>
    %55 = vector.shape_cast %54 : vector<1x8x8x24xbf16> to vector<64x24xbf16>
    %c8 = arith.constant 8 : index
    %c0_29 = arith.constant 0 : index
    %c0_30 = arith.constant 0 : index
    %56 = vector.load %arg2[%c8, %c0_29, %c0_30] : memref<16x24x128xbf16, #tpu.memory_space<vmem>>, vector<1x24x128xbf16>
    %57 = vector.shape_cast %56 : vector<1x24x128xbf16> to vector<24x128xbf16>
    %cst_31 = arith.constant dense<0.000000e+00> : vector<64x128xf32>
    %58 = tpu.matmul %55, %57, %cst_31 {dimension_numbers = #tpu.dot_dimension_numbers<[1], [0], [0], [1], [0, 0, 1, 1], [], []>} : vector<64x24xbf16>, vector<24x128xbf16>, vector<64x128xf32> -> vector<64x128xf32>
    %59 = arith.addf %53, %58 : vector<64x128xf32>
    %60 = vector.extract_strided_slice %4 {offsets = [0, 2, 1, 0], sizes = [1, 8, 8, 24], strides = [1, 1, 1, 1]} : vector<1x11x11x24xbf16> to vector<1x8x8x24xbf16>
    %61 = vector.shape_cast %60 : vector<1x8x8x24xbf16> to vector<64x24xbf16>
    %c9 = arith.constant 9 : index
    %c0_32 = arith.constant 0 : index
    %c0_33 = arith.constant 0 : index
    %62 = vector.load %arg2[%c9, %c0_32, %c0_33] : memref<16x24x128xbf16, #tpu.memory_space<vmem>>, vector<1x24x128xbf16>
    %63 = vector.shape_cast %62 : vector<1x24x128xbf16> to vector<24x128xbf16>
    %cst_34 = arith.constant dense<0.000000e+00> : vector<64x128xf32>
    %64 = tpu.matmul %61, %63, %cst_34 {dimension_numbers = #tpu.dot_dimension_numbers<[1], [0], [0], [1], [0, 0, 1, 1], [], []>} : vector<64x24xbf16>, vector<24x128xbf16>, vector<64x128xf32> -> vector<64x128xf32>
    %65 = arith.addf %59, %64 : vector<64x128xf32>
    %66 = vector.extract_strided_slice %4 {offsets = [0, 2, 2, 0], sizes = [1, 8, 8, 24], strides = [1, 1, 1, 1]} : vector<1x11x11x24xbf16> to vector<1x8x8x24xbf16>
    %67 = vector.shape_cast %66 : vector<1x8x8x24xbf16> to vector<64x24xbf16>
    %c10 = arith.constant 10 : index
    %c0_35 = arith.constant 0 : index
    %c0_36 = arith.constant 0 : index
    %68 = vector.load %arg2[%c10, %c0_35, %c0_36] : memref<16x24x128xbf16, #tpu.memory_space<vmem>>, vector<1x24x128xbf16>
    %69 = vector.shape_cast %68 : vector<1x24x128xbf16> to vector<24x128xbf16>
    %cst_37 = arith.constant dense<0.000000e+00> : vector<64x128xf32>
    %70 = tpu.matmul %67, %69, %cst_37 {dimension_numbers = #tpu.dot_dimension_numbers<[1], [0], [0], [1], [0, 0, 1, 1], [], []>} : vector<64x24xbf16>, vector<24x128xbf16>, vector<64x128xf32> -> vector<64x128xf32>
    %71 = arith.addf %65, %70 : vector<64x128xf32>
    %72 = vector.extract_strided_slice %4 {offsets = [0, 2, 3, 0], sizes = [1, 8, 8, 24], strides = [1, 1, 1, 1]} : vector<1x11x11x24xbf16> to vector<1x8x8x24xbf16>
    %73 = vector.shape_cast %72 : vector<1x8x8x24xbf16> to vector<64x24xbf16>
    %c11 = arith.constant 11 : index
    %c0_38 = arith.constant 0 : index
    %c0_39 = arith.constant 0 : index
    %74 = vector.load %arg2[%c11, %c0_38, %c0_39] : memref<16x24x128xbf16, #tpu.memory_space<vmem>>, vector<1x24x128xbf16>
    %75 = vector.shape_cast %74 : vector<1x24x128xbf16> to vector<24x128xbf16>
    %cst_40 = arith.constant dense<0.000000e+00> : vector<64x128xf32>
    %76 = tpu.matmul %73, %75, %cst_40 {dimension_numbers = #tpu.dot_dimension_numbers<[1], [0], [0], [1], [0, 0, 1, 1], [], []>} : vector<64x24xbf16>, vector<24x128xbf16>, vector<64x128xf32> -> vector<64x128xf32>
    %77 = arith.addf %71, %76 : vector<64x128xf32>
    %78 = vector.extract_strided_slice %4 {offsets = [0, 3, 0, 0], sizes = [1, 8, 8, 24], strides = [1, 1, 1, 1]} : vector<1x11x11x24xbf16> to vector<1x8x8x24xbf16>
    %79 = vector.shape_cast %78 : vector<1x8x8x24xbf16> to vector<64x24xbf16>
    %c12 = arith.constant 12 : index
    %c0_41 = arith.constant 0 : index
    %c0_42 = arith.constant 0 : index
    %80 = vector.load %arg2[%c12, %c0_41, %c0_42] : memref<16x24x128xbf16, #tpu.memory_space<vmem>>, vector<1x24x128xbf16>
    %81 = vector.shape_cast %80 : vector<1x24x128xbf16> to vector<24x128xbf16>
    %cst_43 = arith.constant dense<0.000000e+00> : vector<64x128xf32>
    %82 = tpu.matmul %79, %81, %cst_43 {dimension_numbers = #tpu.dot_dimension_numbers<[1], [0], [0], [1], [0, 0, 1, 1], [], []>} : vector<64x24xbf16>, vector<24x128xbf16>, vector<64x128xf32> -> vector<64x128xf32>
    %83 = arith.addf %77, %82 : vector<64x128xf32>
    %84 = vector.extract_strided_slice %4 {offsets = [0, 3, 1, 0], sizes = [1, 8, 8, 24], strides = [1, 1, 1, 1]} : vector<1x11x11x24xbf16> to vector<1x8x8x24xbf16>
    %85 = vector.shape_cast %84 : vector<1x8x8x24xbf16> to vector<64x24xbf16>
    %c13 = arith.constant 13 : index
    %c0_44 = arith.constant 0 : index
    %c0_45 = arith.constant 0 : index
    %86 = vector.load %arg2[%c13, %c0_44, %c0_45] : memref<16x24x128xbf16, #tpu.memory_space<vmem>>, vector<1x24x128xbf16>
    %87 = vector.shape_cast %86 : vector<1x24x128xbf16> to vector<24x128xbf16>
    %cst_46 = arith.constant dense<0.000000e+00> : vector<64x128xf32>
    %88 = tpu.matmul %85, %87, %cst_46 {dimension_numbers = #tpu.dot_dimension_numbers<[1], [0], [0], [1], [0, 0, 1, 1], [], []>} : vector<64x24xbf16>, vector<24x128xbf16>, vector<64x128xf32> -> vector<64x128xf32>
    %89 = arith.addf %83, %88 : vector<64x128xf32>
    %90 = vector.extract_strided_slice %4 {offsets = [0, 3, 2, 0], sizes = [1, 8, 8, 24], strides = [1, 1, 1, 1]} : vector<1x11x11x24xbf16> to vector<1x8x8x24xbf16>
    %91 = vector.shape_cast %90 : vector<1x8x8x24xbf16> to vector<64x24xbf16>
    %c14 = arith.constant 14 : index
    %c0_47 = arith.constant 0 : index
    %c0_48 = arith.constant 0 : index
    %92 = vector.load %arg2[%c14, %c0_47, %c0_48] : memref<16x24x128xbf16, #tpu.memory_space<vmem>>, vector<1x24x128xbf16>
    %93 = vector.shape_cast %92 : vector<1x24x128xbf16> to vector<24x128xbf16>
    %cst_49 = arith.constant dense<0.000000e+00> : vector<64x128xf32>
    %94 = tpu.matmul %91, %93, %cst_49 {dimension_numbers = #tpu.dot_dimension_numbers<[1], [0], [0], [1], [0, 0, 1, 1], [], []>} : vector<64x24xbf16>, vector<24x128xbf16>, vector<64x128xf32> -> vector<64x128xf32>
    %95 = arith.addf %89, %94 : vector<64x128xf32>
    %96 = vector.extract_strided_slice %4 {offsets = [0, 3, 3, 0], sizes = [1, 8, 8, 24], strides = [1, 1, 1, 1]} : vector<1x11x11x24xbf16> to vector<1x8x8x24xbf16>
    %97 = vector.shape_cast %96 : vector<1x8x8x24xbf16> to vector<64x24xbf16>
    %c15 = arith.constant 15 : index
    %c0_50 = arith.constant 0 : index
    %c0_51 = arith.constant 0 : index
    %98 = vector.load %arg2[%c15, %c0_50, %c0_51] : memref<16x24x128xbf16, #tpu.memory_space<vmem>>, vector<1x24x128xbf16>
    %99 = vector.shape_cast %98 : vector<1x24x128xbf16> to vector<24x128xbf16>
    %cst_52 = arith.constant dense<0.000000e+00> : vector<64x128xf32>
    %100 = tpu.matmul %97, %99, %cst_52 {dimension_numbers = #tpu.dot_dimension_numbers<[1], [0], [0], [1], [0, 0, 1, 1], [], []>} : vector<64x24xbf16>, vector<24x128xbf16>, vector<64x128xf32> -> vector<64x128xf32>
    %101 = arith.addf %95, %100 : vector<64x128xf32>
    %102 = vector.shape_cast %101 : vector<64x128xf32> to vector<1x64x128xf32>
    %c0_53 = arith.constant 0 : index
    %c0_54 = arith.constant 0 : index
    %103 = vector.load %arg3[%c0_53, %c0_54] : memref<64x128xf32, #tpu.memory_space<vmem>>, vector<64x128xf32>
    %104 = vector.shape_cast %103 : vector<64x128xf32> to vector<1x64x128xf32>
    %105 = arith.addf %102, %104 : vector<1x64x128xf32>
    %c0_55 = arith.constant 0 : index
    %c0_56 = arith.constant 0 : index
    %c0_57 = arith.constant 0 : index
    %106 = vector.load %arg4[%c0_55, %c0_56, %c0_57] : memref<1x64x128xf32, #tpu.memory_space<vmem>>, vector<1x64x128xf32>
    tpu.vector_store %arg4[%c0_55, %c0_56, %c0_57], %105 {strides = array<i32>} : memref<1x64x128xf32, #tpu.memory_space<vmem>>, vector<1x64x128xf32>,
    return
  }
  func.func @transform_0(%arg0: i32) -> (i32, i32, i32, i32) {
    %c0_i32 = arith.constant 0 : i32
    %c0_i32_0 = arith.constant 0 : i32
    %c0_i32_1 = arith.constant 0 : i32
    %c0_i32_2 = arith.constant 0 : i32
    return %arg0, %c0_i32, %c0_i32_0, %c0_i32_1 : i32, i32, i32, i32
  }
  func.func @transform_1(%arg0: i32) -> (i32, i32, i32) {
    %c0_i32 = arith.constant 0 : i32
    %c0_i32_0 = arith.constant 0 : i32
    %c0_i32_1 = arith.constant 0 : i32
    %c0_i32_2 = arith.constant 0 : i32
    return %c0_i32, %c0_i32_0, %c0_i32_1 : i32, i32, i32
  }
  func.func @transform_2(%arg0: i32) -> (i32, i32) {
    %c0_i32 = arith.constant 0 : i32
    %c0_i32_0 = arith.constant 0 : i32
    %c0_i32_1 = arith.constant 0 : i32
    return %c0_i32, %c0_i32_0 : i32, i32
  }
  func.func @transform_3(%arg0: i32) -> (i32, i32, i32) {
    %c0_i32 = arith.constant 0 : i32
    %c0_i32_0 = arith.constant 0 : i32
    %c0_i32_1 = arith.constant 0 : i32
    return %arg0, %c0_i32, %c0_i32_0 : i32, i32, i32
  }
}

</mosaic_0001>

<bundles_post_ra>
// kernel: tpu_custom_call.1
= control target key start
LH: loop header
LB: loop body
LE: loop exit
PB: predicated region body
PF: predicated region fallthrough
CT: control target
= control target key end

     0   :  { %8 = vsyncpa [#allocation3], 0  ;;  %s4266_s0 = inlined_call_operand.vmem [shape: f32[2,11,11,24], index: 0, kind: input, shape index: {}]   ;;  %s4267_s1 = inlined_call_operand.vmem [shape: bf16[16,24,128], index: 1, kind: input, shape index: {}]   ;;  %s4268_s2 = inlined_call_operand.vmem [shape: f32[64,128], index: 2, kind: input, shape index: {}]   ;;  %s4269_s3 = inlined_call_operand.hbm [shape: f32[2,64,128], index: 3, kind: output, shape index: {}]  }
   0x1   :  { %10 = vsyncpa [#allocation3 + $0x1], 0  ;;  %s3108_s12 = smov 0   ;;  %s3110_s13 = smov 0  }
   0x2   :  { %s3112_s14 = smov 0   ;;  %s3114_s15 = smov 0  }
   0x3 LB: > { %s3129_s16 = sadd.s32 4294967295, %s3083_s15   ;;  %s2343_s17 = sadd.s32 4294967294, %s3083_s15   ;;  %s3083_s15 = sphi %s3114_s15, %s4341_s15   ;;  %s3079_s14 = sphi %s3112_s14, %s4340_s14   ;;  %s3075_s13 = sphi %s3110_s13, %s4339_s13   ;;  %s3071_s12 = sphi %s3108_s12, %s4338_s12  }
   0x4   : > { %s3133_s18 = sadd.s32 1, %s3083_s15   ;;  %s91_s19 = sadd.s32 1, %s3079_s14 }
   0x5   : > { %s88_s20 = ssub.s32 %s3083_s15, %s3133_s18  ;;  %p101_p0 = scmp.ne.s32.totalorder %s3079_s14, %s3075_s13 }
   0x6   : > { %p89_p1 = scmp.eq.s32.totalorder %s88_s20, 0  ;;  %p102_p2 = scmp.eq.s32.totalorder %s3129_s16, 1 }
   0x7   : > { %p107_p3 = scmp.ne.s32.totalorder %s3075_s13, %s3071_s12  ;;  %p108_p4 = scmp.eq.s32.totalorder %s2343_s17, 1 }
   0x8   : > { %s3144_s21 = scalar_select %p89_p1, %s3079_s14, %s91_s19  }
   0x9   : > { %p3146_p5 = por %p102_p2, %p101_p0  ;;  %p3150_p6 = por %p108_p4, %p107_p3 }
   0xa   : > { %p2346_p7 = scmp.ge.s32.totalorder %s3083_s15, 1  ;;  %p140_p8 = scmp.lt.s32.totalorder %s3083_s15, 3 }
   0xc   : > { %p141_p9 = pnand %p2346_p7, %p140_p8 }
   0xe   : > { %144 = sbr.rel (%p141_p9) target bundleno = 423 (0x1a7), region = 32 }
  0x13   : > { %vm465_vm0 = vcmask 1043456   ;;  %v2947_v0 = vld [vmem:[%s4267_s1 + $0x8] ss:$0 sps:$4 sm:$0xff]   ;;  %v2949_v1 = vld [vmem:[%s4267_s1] sm:$0xff]   ;;  %v2948_v2 = vld [vmem:[%s4267_s1 + $0x14] ss:$0 sps:$4 sm:$0xff]  }
  0x14   : > { %2890 = vmatprep.subr.msk.bf16.mxu1 %vm465_vm0, %v2947_v0  ;;  %v560_v3 = vsel %vm465_vm0, %v2947_v0, 0  ;;  %v2950_v4 = vld [vmem:[%s4267_s1 + $0xc] sm:$0xff]   ;;  %2889 = vmatprep.subr.msk.bf16.mxu0 %vm465_vm0, %v2948_v2  ;;  %v467_v5 = vsel %vm465_vm0, %v2948_v2, 0  ;;  %p164_p10 = scmp.lt.s32.totalorder %s3129_s16, 1  ;;  %v2951_v6 = vld [vmem:[%s4267_s1 + $0x20] ss:$0 sps:$4 sm:$0xff]  }
  0x15   : > { %2710 = vmatpush3.bf16.msra.mxu1 %v560_v3  ;;  %2698 = vmatpush3.bf16.msra.mxu0 %v467_v5  ;;  %v3180_v7 = vld [vmem:[%s4267_s1 + $0x2c] ss:$0 sps:$4 sm:$0xff]   ;;  %vm452_vm1 = vcmask 195584   ;;  %v3209_v38 = vld [vmem:[%s4267_s1 + $0x38] ss:$0 sps:$4 sm:$0xff]   ;;  %v3212_v39 = vsel %vm465_vm0, %v2951_v6, 0 }
  0x16   : > { %2711 = vmatprep.subr.bf16.mxu1 %v2949_v1  ;;  %2699 = vmatprep.subr.bf16.mxu0 %v2950_v4  ;;  %s165_s5 = scalar_select %p164_p10, %s3129_s16, 1  ;;  %v3218_v43 = vld [vmem:[%s4267_s1 + $0x44] ss:$0 sps:$4 sm:$0xff]   ;;  %vm312_vm2 = vsmask.f32 3328  ;;  %v896_v51 = vsel %vm465_vm0, %v3180_v7, 0 }
  0x17   : > { %vm313_vm3 = vsmask.f32 7440  ;;  %v3227_v52 = vsel %vm465_vm0, %v3209_v38, 0  ;;  %v3235_v56 = vsel %vm465_vm0, %v3218_v43, 0  ;;  %v2954_v2 = vld [vmem:[%s4267_s1 + $0x24] sm:$0xff]   ;;  %vm627_vm7 = vcmask 1042432  }
  0x18   : > { %s2905_s10 = smul.u32 176, %s165_s5  ;;  %vm3299_vm4 = vmor %vm312_vm2, %vm313_vm3  ;;  %vm775_vm5 = vsmask.f32 2304  ;;  %vm776_vm6 = vsmask.f32 6416  ;;  %vm628_vm8 = vcmask 1046532  }
  0x19   : > { %2712 = vmatpush3.bf16.msra.mxu1 %v2949_v1  ;;  %2700 = vmatpush3.bf16.msra.mxu0 %v2950_v4  ;;  %vm3467_vm9 = vmor %vm775_vm5, %vm776_vm6  ;;  %s161_s17 = sand.u32 1, %s3075_s13   ;;  %s2600_s11 = sshll.u32 %s3129_s16, 10 }
  0x1a   : > { %2892 = vmatprep.subr.msk.bf16.mxu1 %vm465_vm0, %v3180_v7  ;;  %s3187_s19 = scalar_lea.vmem %s4266_s0, %s2905_s10  ;;  %2891 = vmatprep.subr.msk.bf16.mxu0 %vm465_vm0, %v2951_v6  ;;  %vm3496_vm10 = vmor %vm627_vm7, %vm628_vm8  ;;  %s2347_s20 = sshll.u32 %s161_s17, 6 }
  0x1b   : > { %v170_v8 = vld [vmem:[%s3187_s19] sm:$0xff]  ;;  %v172_v9 = vld [vmem:[%s3187_s19 + $0x10] sm:$0xff]  ;;  %v171_v16 = vld [vmem:[%s3187_s19 + $0x8] sm:$0x7]  ;;  %s4187_s29 = scalar_lea.vmem [#allocation2], %s2347_s20  ;;  %s4218_s27 = scalar_lea.hbm %s4269_s3, %s2600_s11 }
  0x1c   : > { %v174_v10 = vld [vmem:[%s3187_s19 + $0x20] sm:$0xff]  ;;  %v192_v11 = vadd.f32 1e-08, %v170_v8  ;;  %v194_v12 = vadd.f32 1e-08, %v172_v9  ;;  %v176_v13 = vld [vmem:[%s3187_s19 + $0x30] sm:$0xff] }
  0x1d   : > { %v196_v14 = vadd.f32 1e-08, %v174_v10  ;;  %v198_v15 = vadd.f32 1e-08, %v176_v13  ;;  %v173_v17 = vld [vmem:[%s3187_s19 + $0x18] sm:$0x7] }
  0x1e   : > { %2979 = vlog2.f32 %v192_v11  ;;  %v175_v18 = vld [vmem:[%s3187_s19 + $0x28] sm:$0x7]  ;;  %v177_v19 = vld [vmem:[%s3187_s19 + $0x38] sm:$0x7]  ;;  %v178_v20 = vld [vmem:[%s3187_s19 + $0x40] sm:$0xff]  ;;  %s2281_s20 = sshll.u32 %s4187_s29, 4  ;;  %s4220_s20 = int_to_ptr.vmem [resolvable:$true] %s2281_s20 }
  0x1f   : > { %2981 = vlog2.f32 %v194_v12  ;;  %v193_v21 = vadd.f32 1e-08, %v171_v16  ;;  %v195_v22 = vadd.f32 1e-08, %v173_v17  ;;  %v179_v23 = vld [vmem:[%s3187_s19 + $0x48] sm:$0x7] }
  0x20   : > { %2983 = vlog2.f32 %v196_v14  ;;  %v197_v24 = vadd.f32 1e-08, %v175_v18  ;;  %v199_v25 = vadd.f32 1e-08, %v177_v19  ;;  %v180_v26 = vld [vmem:[%s3187_s19 + $0x50] sm:$0xff]  ;;  %v182_v27 = vld [vmem:[%s3187_s19 + $0x60] sm:$0xff] }
  0x21   : > { %2985 = vlog2.f32 %v198_v15  ;;  %v184_v28 = vld [vmem:[%s3187_s19 + $0x70] sm:$0xff]  ;;  %v200_v29 = vadd.f32 1e-08, %v178_v20  ;;  %v201_v30 = vadd.f32 1e-08, %v179_v23  ;;  %v186_v41 = vld [vmem:[%s3187_s19 + $0x80] sm:$0xff] }
  0x22   : > { %2987 = vlog2.f32 %v193_v21  ;;  %v202_v31 = vadd.f32 1e-08, %v180_v26  ;;  %v204_v32 = vadd.f32 1e-08, %v182_v27  ;;  %v206_v33 = vadd.f32 1e-08, %v184_v28 }
  0x23   : > { %2989 = vlog2.f32 %v195_v22  ;;  %v181_v34 = vld [vmem:[%s3187_s19 + $0x58] sm:$0x7]  ;;  %v183_v35 = vld [vmem:[%s3187_s19 + $0x68] sm:$0x7]  ;;  %v208_v46 = vadd.f32 1e-08, %v186_v41 }
  0x24   : > { %2991 = vlog2.f32 %v197_v24  ;;  %v185_v36 = vld [vmem:[%s3187_s19 + $0x78] sm:$0x7]  ;;  %v203_v37 = vadd.f32 1e-08, %v181_v34  ;;  %v205_v40 = vadd.f32 1e-08, %v183_v35 }
  0x25   : > { %2993 = vlog2.f32 %v199_v25  ;;  %v207_v42 = vadd.f32 1e-08, %v185_v36  ;;  %v187_v45 = vld [vmem:[%s3187_s19 + $0x88] sm:$0x7]  ;;  %s4226_s16 = scalar_lea.sflag [#allocation3], %s161_s17  ;;  %s3023_s28 = scalar_lea.vmem %s4220_s20, 1024 }
  0x26   : > { %2995 = vlog2.f32 %v200_v29  ;;  %v209_v60 = vadd.f32 1e-08, %v187_v45  ;;  %p3024_p11 = scmp.ne.s32.totalorder %s4220_s20, %s3023_s28  ;;  %s3085_s30 = smov [#allocation2]  }
  0x27   : > { %2997 = vlog2.f32 %v201_v30  ;;  %s3027_s4 = sshll.u32 %s3085_s30, 4  ;;  %s3028_s4 = int_to_ptr.vmem [resolvable:$false] %s3027_s4 }
  0x28   : > { %2999 = vlog2.f32 %v202_v31  ;;  %p3025_p12 = pnand %p3024_p11, %p3146_p5  ;;  %s3029_s5 = scalar_lea.vmem %s3028_s4, 2048 }
  0x29   : > { %3001 = vlog2.f32 %v204_v32  ;;  %p3030_p0 = scmp.lt.s32.totalorder %s4220_s20, %s3028_s4  ;;  %p3031_p1 = scmp.lt.s32.totalorder %s3029_s5, %s3023_s28 }
  0x2a   : > { %3003 = vlog2.f32 %v206_v33  ;;  %p3026_p13 = pneg %p3025_p12 }
  0x2b   : > { %v2980_v44 = vpop.eup %2979  ;;  %3005 = vlog2.f32 %v203_v37  ;;  %p3032_p2 = por %p3031_p1, %p3030_p0 }
  0x2c   : > { %v2982_v47 = vpop.eup %2981  ;;  %v215_v48 = vmul.f32 0.6931472, %v2980_v44  ;;  %3007 = vlog2.f32 %v205_v40 }
  0x2d   : > { %v2984_v49 = vpop.eup %2983  ;;  %v3221_v50 = vmul.f32 0.6931472, %v2982_v47  ;;  %3009 = vlog2.f32 %v207_v42  ;;  %p3033_p3 = pnand %p3032_p2, %p3026_p13 }
  0x2e   : > { %v2986_v53 = vpop.eup %2985  ;;  %v3229_v54 = vpack.c.bf16 %v215_v48, %v215_v48  ;;  %v3231_v55 = vmul.f32 0.6931472, %v2984_v49  ;;  %3011 = vlog2.f32 %v208_v46 }
  0x2f   : > { %v2988_v57 = vpop.eup %2987  ;;  %v2584_v58 = vpack.c.bf16 %v3221_v50, %v215_v48  ;;  %v3238_v59 = vmul.f32 0.6931472, %v2986_v53  ;;  %v3242_v62 = vpack.c.bf16 %v3221_v50, %v3221_v50  ;;  %3013 = vlog2.f32 %v209_v60 }
  0x30   : > { %v2990_v61 = vpop.eup %2989  ;;  %v316_v63 = vshrl.u32 %v3229_v54, 16  ;;  %v319_v0 = vshll.u32 %v3229_v54, 16  ;;  %v3253_v4 = vpack.c.bf16 %v3231_v55, %v3231_v55  ;;  %v217_v6 = vmul.f32 0.6931472, %v2988_v57 }
  0x31   : > { %v2992_v3 = vpop.eup %2991  ;;  %2713 = vmatprep.mubr.msk.bf16.mxu1 %vm452_vm1, %v2584_v58  ;;  %v3257_v5 = vpack.c.bf16 %v3238_v59, %v3231_v55  ;;  %v221_v7 = vmul.f32 0.6931472, %v2990_v61  ;;  %v3265_v11 = vpack.c.bf16 %v3238_v59, %v3238_v59  ;;  %v330_v26 = vshrl.u32 %v3242_v62, 16 }
  0x32   : > { %v2994_v8 = vpop.eup %2993  ;;  %v3259_v9 = vrot.slane %v316_v63, 5  ;;  %v3261_v10 = vrot.slane %v319_v0, 6  ;;  %v225_v12 = vmul.f32 0.6931472, %v2992_v3  ;;  %v3270_v16 = vpack.c.bf16 %v217_v6, %v217_v6 }
  0x33   : > { %v2996_v13 = vpop.eup %2995  ;;  %2714 = vmatmul.mubr.msk.bf16.vlgmr.msra.gmra.mxu1 %vm452_vm1, %v3257_v5  ;;  %v229_v15 = vmul.f32 0.6931472, %v2994_v8  ;;  %v3272_v17 = vpack.c.bf16 %v221_v7, %v221_v7  ;;  %v318_v21 = vrot.slane %v316_v63, 4  ;;  %v321_v22 = vrot.slane %v319_v0, 5 }
  0x34   : > { %v2998_v18 = vpop.eup %2997  ;;  %v3274_v19 = vmul.f32 0.6931472, %v2996_v13  ;;  %v3276_v20 = vpack.c.bf16 %v225_v12, %v225_v12  ;;  %2734 = vmatpush3.bf16.msra.mxu1 %v896_v51  ;;  %v325_v25 = vshll.u32 %v3270_v16, 16  ;;  %v333_v30 = vshll.u32 %v3242_v62, 16 }
  0x35   : > { %v233_v23 = vmul.f32 0.6931472, %v2998_v18  ;;  %v3278_v24 = vpack.c.bf16 %v229_v15, %v229_v15  ;;  %2735 = vmatprep.subr.bf16.mxu1 %v2954_v2  ;;  %v3282_v27 = vpop.eup %2999  ;;  %v322_v29 = vor.u32 %v321_v22, %v318_v21  ;;  %v339_v31 = vshll.u32 %v3272_v17, 16 }
  0x36   : > { %v3286_v28 = vpack.c.bf16 %v3274_v19, %v3274_v19  ;;  %v3290_v32 = vpop.eup %3001  ;;  %v327_v34 = vrot.slane %v325_v25, 5  ;;  %v332_v35 = vrot.slane %v330_v26, 4  ;;  %v344_v36 = vshrl.u32 %v3253_v4, 16 }
  0x37   : > { %v3292_v33 = vpack.c.bf16 %v233_v23, %v233_v23  ;;  %v3295_v37 = vpop.eup %3003  ;;  %v323_v41 = vrot.slane %v322_v29, 4  ;;  %v335_v42 = vrot.slane %v333_v30, 5  ;;  %v341_v44 = vrot.slane %v339_v31, 5 }
  0x38   : > { %v347_v45 = vshll.u32 %v3253_v4, 16  ;;  %2736 = vmatpush3.bf16.msra.mxu1 %v2954_v2  ;;  %v3308_v46 = vpop.eup %3005  ;;  %v346_v47 = vrot.slane %v344_v36, 4  ;;  %v353_v48 = vshll.u32 %v3276_v20, 16  ;;  %v358_v49 = vshrl.u32 %v3265_v11, 16 }
  0x39   : > { %v361_v51 = vshll.u32 %v3265_v11, 16  ;;  %2894 = vmatprep.subr.msk.bf16.mxu1 %vm465_vm0, %v3218_v43  ;;  %v3315_v53 = vpop.eup %3007  ;;  %v336_v57 = vor.u32 %v335_v42, %v332_v35  ;;  %v367_v61 = vshll.u32 %v3278_v24, 16  ;;  %v328_v0 = vsel %vm3299_vm4, %v323_v41, %v327_v34 }
  0x3a   : > { %v349_v58 = vrot.slane %v347_v45, 5  ;;  %v3318_v63 = vpop.eup %3009  ;;  %v360_v2 = vrot.slane %v358_v49, 4  ;;  %v4272_v6 = vshrl.u32 %v3286_v28, 16  ;;  %v355_v12 = vrot.slane %v353_v48, 5 }
  0x3b   : > { %v363_v3 = vrot.slane %v361_v51, 5  ;;  %v3323_v7 = vpop.eup %3011  ;;  %v337_v8 = vrot.slane %v336_v57, 4  ;;  %v4271_v13 = vshll.u32 %v3286_v28, 16  ;;  %v369_v18 = vrot.slane %v367_v61, 5 }
  0x3c   : > { %v350_v43 = vor.u32 %v349_v58, %v346_v47  ;;  %v374_v60 = vrot.slane %v4272_v6, 4  ;;  %v4270_v21 = vshll.u32 %v3292_v33, 16 }
  0x3d   : > { %v364_v15 = vor.u32 %v363_v3, %v360_v2  ;;  %v3332_v23 = vsel %vm3299_vm4, %v337_v8, %v341_v44  ;;  %v377_v34 = vrot.slane %v4271_v13, 5  ;;  %v3345_v2 = vrot.slane %v325_v25, 6  ;;  %v2953_v25 = vld [vmem:[%s4267_s1 + $0x18] sm:$0xff]  }
  0x3e   : > { %v351_v29 = vrot.slane %v350_v43, 4  ;;  %v2368_v41 = vcombine.low %v328_v0, %v3332_v23  ;;  %v383_v44 = vrot.slane %v4270_v21, 5  ;;  %v3352_v0 = vrot.slane %v330_v26, 5 }
  0x3f   : > { %v365_v35 = vrot.slane %v364_v15, 4  ;;  %v378_v58 = vor.u32 %v377_v34, %v374_v60  ;;  %v798_v8 = vrot.slane %v344_v36, 5  ;;  %v799_v43 = vrot.slane %v347_v45, 6 }
  0x40   : > { %v3341_v57 = vsel %vm3299_vm4, %v351_v29, %v355_v12  ;;  %2701 = vmatprep.mubr.msk.bf16.mxu0 %vm452_vm1, %v2368_v41  ;;  %v802_v60 = vshrl.u32 %v3276_v20, 16  ;;  %v3359_v29 = vrot.slane %v353_v48, 6  ;;  %v808_v34 = vrot.slane %v358_v49, 5 }
  0x41   : > { %v3349_v3 = vsel %vm3299_vm4, %v365_v35, %v369_v18  ;;  %v379_v15 = vrot.slane %v378_v58, 4  ;;  %v800_v18 = vor.u32 %v799_v43, %v798_v8  ;;  %v809_v35 = vrot.slane %v361_v51, 6 }
  0x42   : > { %v3356_v12 = vcombine.low %v3341_v57, %v3349_v3  ;;  %v812_v26 = vshrl.u32 %v3278_v24, 16  ;;  %v3367_v36 = vrot.slane %v333_v30, 6  ;;  %v3371_v45 = vrot.slane %v339_v31, 6 }
  0x43   : > { %v3373_v41 = vrot.slane %v802_v60, 5  ;;  %v3375_v48 = vrot.slane %v367_v61, 6  ;;  %v3381_v49 = vsel %vm3299_vm4, %v379_v15, %v383_v44  ;;  %v3383_v51 = vrot.slane %v800_v18, 4  ;;  %v3399_v44 = vpop.eup %3013 }
  0x44   : > { %2702 = vmatmul.mubr.msk.bf16.vlgmr.msra.gmra.mxu0 %vm452_vm1, %v3356_v12  ;;  %v810_v30 = vor.u32 %v809_v35, %v808_v34  ;;  %v3385_v58 = vrot.slane %v812_v26, 5  ;;  %v3391_v61 = vmul.f32 0.6931472, %v3282_v27  ;;  %v3394_v8 = vmul.f32 0.6931472, %v3290_v32 }
  0x45   : > { %2722 = vmatpush3.bf16.msra.mxu0 %v3212_v39  ;;  %v806_v31 = vor.u32 %v3359_v29, %v3373_v41  ;;  %v3397_v43 = vmul.f32 0.6931472, %v3295_v37  ;;  %v237_v39 = vmul.f32 0.6931472, %v3308_v46  ;;  %v241_v29 = vmul.f32 0.6931472, %v3315_v53 }
  0x46   : > { %2723 = vmatprep.subr.bf16.mxu0 %v2953_v25  ;;  %v811_v15 = vrot.slane %v810_v30, 4  ;;  %v816_v60 = vor.u32 %v3375_v48, %v3385_v58  ;;  %v3407_v27 = vpack.c.bf16 %v3391_v61, %v3391_v61  ;;  %v3411_v32 = vpack.c.bf16 %v3391_v61, %v3274_v19 }
  0x47   : > { %v3415_v37 = vpack.c.bf16 %v3394_v8, %v3394_v8  ;;  %v3419_v18 = vpack.c.bf16 %v3397_v43, %v3397_v43  ;;  %v3423_v46 = vpack.c.bf16 %v3397_v43, %v3394_v8  ;;  %v3425_v53 = vpack.c.bf16 %v237_v39, %v237_v39 }
  0x48   : > { %4289 = vst [vmem:[#allocation5_spill] sm:$0xff] %v3411_v32  ;;  %v245_v34 = vmul.f32 0.6931472, %v3318_v63  ;;  %v3428_v35 = vpack.c.bf16 %v241_v29, %v241_v29  ;;  %2717 = vmatprep.mubr.msk.bf16.mxu1 %vm452_vm1, %v3411_v32  ;;  %v4273_v26 = vshrl.u32 %v3407_v27, 16  ;;  %v4274_v41 = vshll.u32 %v3407_v27, 16 }
  0x49   : > { %4290 = vst [vmem:[#allocation6_spill] sm:$0xff] %v3423_v46  ;;  %2724 = vmatpush3.bf16.msra.mxu0 %v2953_v25  ;;  %v4275_v48 = vshrl.u32 %v3415_v37, 16  ;;  %v4276_v30 = vshll.u32 %v3415_v37, 16  ;;  %2718 = vmatmul.mubr.msk.bf16.gmra.mxu1 %vm452_vm1, %v3423_v46  ;;  %v4277_v63 = vshll.u32 %v3425_v53, 16  ;;  %v4278_v39 = vshrl.u32 %v3419_v18, 16 }
  0x4a   : > { %2893 = vmatprep.subr.msk.bf16.mxu0 %vm465_vm0, %v3209_v38  ;;  %v3441_v25 = vpack.c.bf16 %v245_v34, %v245_v34  ;;  %v4280_v58 = vshll.u32 %v3428_v35, 16  ;;  %v388_v29 = vrot.slane %v4273_v26, 4  ;;  %v391_v21 = vrot.slane %v4274_v41, 5 }
  0x4b   : > { %v402_v38 = vrot.slane %v4275_v48, 4  ;;  %v405_v13 = vrot.slane %v4276_v30, 5  ;;  %v397_v34 = vrot.slane %v4277_v63, 5  ;;  %v416_v22 = vrot.slane %v4278_v39, 4  ;;  %v2971_v63 = vld [vmem:[%s4267_s1 + $0x98] ss:$0 sps:$4 sm:$0xff]  }
  0x4c   : > { %v411_v6 = vrot.slane %v4280_v58, 5  ;;  %v4279_v26 = vshll.u32 %v3419_v18, 16  ;;  %v392_v47 = vor.u32 %v391_v21, %v388_v29  ;;  %v4283_v41 = vshll.u32 %v3441_v25, 16 }
  0x4d   : > { %v406_v1 = vor.u32 %v405_v13, %v402_v38  ;;  %v780_v48 = vor.u32 %v3261_v10, %v3259_v9  ;;  %v782_v39 = vshrl.u32 %v3270_v16, 16  ;;  %v790_v21 = vor.u32 %v3367_v36, %v3352_v0 }
  0x4e   : > { %v419_v30 = vrot.slane %v4279_v26, 5  ;;  %v792_v13 = vshrl.u32 %v3272_v17, 16  ;;  %v393_v29 = vrot.slane %v392_v47, 4  ;;  %v425_v9 = vrot.slane %v4283_v41, 5 }
  0x4f   : > { %v407_v38 = vrot.slane %v406_v1, 4  ;;  %v781_v10 = vrot.slane %v780_v48, 4  ;;  %v784_v58 = vrot.slane %v782_v39, 5  ;;  %v791_v14 = vrot.slane %v790_v21, 4 }
  0x50   : > { %v420_v26 = vor.u32 %v419_v30, %v416_v22  ;;  %v794_v42 = vrot.slane %v792_v13, 5  ;;  %v3479_v46 = vsel %vm3299_vm4, %v393_v29, %v397_v34  ;;  %v3488_v1 = vsel %vm3467_vm9, %v3383_v51, %v806_v31 }
  0x51   : > { %v3483_v32 = vsel %vm3299_vm4, %v407_v38, %v411_v6  ;;  %v3492_v47 = vsel %vm3467_vm9, %v811_v15, %v816_v60  ;;  %v3502_v0 = vcombine.low %v3381_v49, %v3479_v46  ;;  %v786_v36 = vor.u32 %v3345_v2, %v784_v58 }
  0x52   : > { %v421_v6 = vrot.slane %v420_v26, 4  ;;  %v796_v51 = vor.u32 %v3371_v45, %v794_v42  ;;  %v3508_v31 = vcombine.low %v3488_v1, %v3492_v47  ;;  %v632_v15 = vrot.slane %v3270_v16, 5 }
  0x53   : > { %v2389_v60 = vrot.slane %v3242_v62, 9  ;;  %v636_v48 = vrot.slane %v3272_v17, 5  ;;  %2705 = vmatprep.mubr.msk.bf16.mxu0 %vm452_vm1, %v3502_v0  ;;  %v787_v42 = vsel %vm3467_vm9, %v781_v10, %v786_v36  ;;  %v4296_v16 = vrot.slane %v3276_v20, 5 }
  0x54   : > { %4295 = vst [vmem:[#allocation7_spill] sm:$0xff] %v3508_v31  ;;  %v3517_v26 = vsel %vm3299_vm4, %v421_v6, %v425_v9  ;;  %v3523_v2 = vsel %vm3467_vm9, %v791_v14, %v796_v51  ;;  %v4297_v62 = vrot.slane %v3253_v4, 9  ;;  %v4298_v58 = vrot.slane %v3229_v54, 9  ;;  %v2958_v9 = vld [vmem:[%s4267_s1 + $0x3c] sm:$0xff]  }
  0x55   : > { %v3535_v45 = vcombine.low %v3483_v32, %v3517_v26  ;;  %v2412_v30 = vcombine.low %v787_v42, %v3523_v2  ;;  %v3544_v20 = vsel %vm3496_vm10, %v2389_v60, %v636_v48  ;;  %v4299_v39 = vrot.slane %v3278_v24, 5 }
  0x56   : > { %v3531_v17 = vsel %vm3496_vm10, %v4297_v62, %v4296_v16  ;;  %v633_v14 = vsel %vm3496_vm10, %v4298_v58, %v632_v15  ;;  %v4300_v34 = vrot.slane %v3265_v11, 9  ;;  %v4301_v13 = vshrl.u32 %v3286_v28, 16 }
  0x57   : > { %v2399_v4 = vcombine.low %v633_v14, %v3544_v20  ;;  %v4302_v29 = vshll.u32 %v3286_v28, 16  ;;  %2706 = vmatmul.mubr.msk.bf16.gmra.mxu0 %vm452_vm1, %v3535_v45  ;;  %2737 = vmatprep.mubr.msk.bf16.mxu1 %vm452_vm1, %v2412_v30  ;;  %v822_v24 = vshrl.u32 %v3292_v33, 16  ;;  %v4303_v10 = vshll.u32 %v3292_v33, 16 }
  0x58   : > { %v3553_v21 = vsel %vm3496_vm10, %v4300_v34, %v4299_v39  ;;  %v818_v54 = vrot.slane %v4301_v13, 5  ;;  %v4304_v36 = vshrl.u32 %v3407_v27, 16  ;;  %2738 = vmatmul.mubr.msk.bf16.vlgmr.msra.gmra.mxu1 %vm452_vm1, %v3508_v31  ;;  %v4305_v60 = vshll.u32 %v3407_v27, 16 }
  0x59   : > { %v819_v38 = vrot.slane %v4302_v29, 6  ;;  %v3567_v11 = vcombine.low %v3531_v17, %v3553_v21  ;;  %v825_v6 = vrot.slane %v4303_v10, 6  ;;  %2725 = vmatprep.mubr.msk.bf16.mxu0 %vm452_vm1, %v2399_v4  ;;  %v832_v42 = vshrl.u32 %v3425_v53, 16  ;;  %2758 = vmatpush3.bf16.msra.mxu1 %v3235_v56  ;;  %v3593_v56 = vld [vmem:[%s4267_s1 + $0x5c] ss:$0 sps:$4 sm:$0xff]  }
  0x5a   : > { %v828_v51 = vrot.slane %v4304_v36, 5  ;;  %v829_v48 = vrot.slane %v4305_v60, 6  ;;  %v4306_v16 = vshll.u32 %v3425_v53, 16  ;;  %v824_v30 = vrot.slane %v822_v24, 5  ;;  %2759 = vmatprep.subr.bf16.mxu1 %v2958_v9 }
  0x5b   : > { %v820_v15 = vor.u32 %v819_v38, %v818_v54  ;;  %v4307_v58 = vshrl.u32 %v3415_v37, 16  ;;  %v4308_v39 = vshll.u32 %v3415_v37, 16  ;;  %v842_v4 = vshrl.u32 %v3428_v35, 16 }
  0x5c   : > { %v835_v62 = vrot.slane %v4306_v16, 6  ;;  %v830_v54 = vor.u32 %v829_v48, %v828_v51  ;;  %v834_v29 = vrot.slane %v832_v42, 5  ;;  %v4309_v38 = vshll.u32 %v3428_v35, 16 }
  0x5d   : > { %v838_v14 = vrot.slane %v4307_v58, 5  ;;  %v839_v34 = vrot.slane %v4308_v39, 6  ;;  %v821_v13 = vrot.slane %v820_v15, 4  ;;  %v826_v24 = vor.u32 %v825_v6, %v824_v30  ;;  %2760 = vmatpush3.bf16.msra.mxu1 %v2958_v9 }
  0x5e   : > { %v845_v10 = vrot.slane %v4309_v38, 6  ;;  %v844_v60 = vrot.slane %v842_v4, 5  ;;  %v4310_v16 = vshrl.u32 %v3419_v18, 16  ;;  %v831_v39 = vrot.slane %v830_v54, 4  ;;  %2896 = vmatprep.subr.msk.bf16.mxu1 %vm465_vm0, %v3593_v56 }
  0x5f   : > { %v840_v36 = vor.u32 %v839_v34, %v838_v14  ;;  %v836_v41 = vor.u32 %v835_v62, %v834_v29  ;;  %v4311_v51 = vshll.u32 %v3419_v18, 16  ;;  %v852_v48 = vshrl.u32 %v3441_v25, 16  ;;  %v2957_v14 = vld [vmem:[%s4267_s1 + $0x30] sm:$0xff]   ;;  %2726 = vmatmul.mubr.msk.bf16.vlgmr.msra.gmra.mxu0 %vm452_vm1, %v3567_v11 }
  0x60   : > { %v848_v58 = vrot.slane %v4310_v16, 5  ;;  %v3602_v42 = vsel %vm3467_vm9, %v821_v13, %v826_v24  ;;  %v846_v31 = vor.u32 %v845_v10, %v844_v60  ;;  %v4312_v6 = vshll.u32 %v3441_v25, 16  ;;  %2746 = vmatpush3.bf16.msra.mxu0 %v3227_v52 }
  0x61   : > { %v849_v15 = vrot.slane %v4311_v51, 6  ;;  %v841_v38 = vrot.slane %v840_v36, 4  ;;  %v3611_v62 = vsel %vm3467_vm9, %v831_v39, %v836_v41  ;;  %v854_v4 = vrot.slane %v852_v48, 5  ;;  %2747 = vmatprep.subr.bf16.mxu0 %v2957_v14 }
  0x62   : > { %v855_v30 = vrot.slane %v4312_v6, 6  ;;  %v3619_v13 = vcombine.low %v3602_v42, %v3611_v62  ;;  %v2392_v9 = vrot.slane %v3286_v28, 9  ;;  %v648_v41 = vrot.slane %v3292_v33, 5 }
  0x63   : > { %v850_v34 = vor.u32 %v849_v15, %v848_v58  ;;  %v3623_v54 = vsel %vm3467_vm9, %v841_v38, %v846_v31  ;;  %v2393_v24 = vrot.slane %v3407_v27, 9  ;;  %v652_v36 = vrot.slane %v3425_v53, 5  ;;  %v188_v38 = vld [vmem:[%s3187_s19 + $0x90] sm:$0xff] }
  0x64   : > { %v856_v10 = vor.u32 %v855_v30, %v854_v4  ;;  %2741 = vmatprep.mubr.msk.bf16.mxu1 %vm452_vm1, %v3619_v13  ;;  %v3634_v60 = vsel %vm3496_vm10, %v2392_v9, %v648_v41  ;;  %v2394_v28 = vrot.slane %v3415_v37, 9  ;;  %v656_v33 = vrot.slane %v3428_v35, 5  ;;  %v2959_v37 = vld [vmem:[%s4267_s1 + $0x50] ss:$0 sps:$4 sm:$0xff]   ;;  %2748 = vmatpush3.bf16.msra.mxu0 %v2957_v14 }
  0x65   : > { %v851_v29 = vrot.slane %v850_v34, 4  ;;  %v2395_v52 = vrot.slane %v3419_v18, 9  ;;  %v2440_v31 = vcombine.low %v3332_v23, %v3341_v57  ;;  %v3647_v53 = vsel %vm3496_vm10, %v2393_v24, %v652_v36  ;;  %2895 = vmatprep.subr.msk.bf16.mxu0 %vm465_vm0, %v2959_v37  ;;  %v189_v34 = vld [vmem:[%s3187_s19 + $0x98] sm:$0x7] }
  0x66   : > { %v660_v16 = vrot.slane %v3441_v25, 5  ;;  %v3659_v23 = vcombine.low %v3634_v60, %v3647_v53  ;;  %v3663_v57 = vsel %vm3496_vm10, %v2394_v28, %v656_v33  ;;  %v2588_v25 = vpack.c.bf16 %v3231_v55, %v3221_v50 }
  0x67   : > { %v3643_v27 = vsel %vm3467_vm9, %v851_v29, %v856_v10  ;;  %v3672_v58 = vmul.f32 0.6931472, %v3323_v7  ;;  %v249_v51 = vmul.f32 0.6931472, %v3399_v44  ;;  %v3698_v15 = vcombine.low %v3349_v3, %v3381_v49  ;;  %v2962_v3 = vld [vmem:[%s4267_s1 + $0x54] sm:$0xff]   ;;  %v190_v29 = vld [vmem:[%s3187_s19 + $0xa0] sm:$0xff] }
  0x68   : > { %v3655_v18 = vcombine.low %v3623_v54, %v3643_v27  ;;  %v3667_v35 = vsel %vm3496_vm10, %v2395_v52, %v660_v16  ;;  %2729 = vmatprep.mubr.msk.bf16.mxu0 %vm452_vm1, %v3659_v23  ;;  %v3704_v6 = vcombine.low %v3479_v46, %v3483_v32  ;;  %v3709_v4 = vpack.c.bf16 %v3274_v19, %v3238_v59  ;;  %v191_v10 = vld [vmem:[%s3187_s19 + $0xa8] sm:$0x7] }
  0x69   : > { %v3680_v39 = vcombine.low %v3663_v57, %v3667_v35  ;;  %v3687_v50 = vpack.c.bf16 %v3672_v58, %v3672_v58  ;;  %v3691_v55 = vpack.c.bf16 %v249_v51, %v249_v51  ;;  %v1352_v9 = vsel %vm465_vm0, %v3593_v56, 0  ;;  %v2961_v19 = vld [vmem:[%s4267_s1 + $0x48] sm:$0xff]  }
  0x6a   : > { %2742 = vmatmul.mubr.msk.bf16.gmra.mxu1 %vm452_vm1, %v3655_v18  ;;  %v3718_v32 = vpack.c.bf16 %v3394_v8, %v3391_v61  ;;  %v210_v46 = vadd.f32 1e-08, %v188_v38  ;;  %v1236_v59 = vsel %vm465_vm0, %v2959_v37, 0  ;;  %v211_v56 = vadd.f32 1e-08, %v189_v34 }
  0x6b   : > { %2761 = vmatprep.mubr.msk.bf16.mxu1 %vm452_vm1, %v2440_v31  ;;  %2730 = vmatmul.mubr.msk.bf16.gmra.mxu0 %vm452_vm1, %v3680_v39  ;;  %v1082_v7 = vshrl.u32 %v3687_v50, 16  ;;  %v1085_v44 = vshll.u32 %v3687_v50, 16  ;;  %v1091_v48 = vshll.u32 %v3691_v55, 16  ;;  %v2964_v61 = vld [vmem:[%s4267_s1 + $0x74] ss:$0 sps:$4 sm:$0xff]   ;;  %v1315_v31 = vshrl.u32 %v3691_v55, 16 }
  0x6c   : > { %2749 = vmatprep.mubr.msk.bf16.mxu0 %vm452_vm1, %v2588_v25  ;;  %3015 = vlog2.f32 %v210_v46  ;;  %v212_v8 = vadd.f32 1e-08, %v190_v29  ;;  %v213_v36 = vadd.f32 1e-08, %v191_v10  ;;  %v2963_v37 = vld [vmem:[%s4267_s1 + $0x68] ss:$0 sps:$4 sm:$0xff]   ;;  %v2467_v25 = vcombine.low %v3523_v2, %v3488_v1 }
  0x6d   : > { %v1084_v30 = vrot.slane %v1082_v7, 4  ;;  %v1087_v14 = vrot.slane %v1085_v44, 5  ;;  %v1093_v41 = vrot.slane %v1091_v48, 5  ;;  %3017 = vlog2.f32 %v211_v56  ;;  %v2967_v56 = vld [vmem:[%s4267_s1 + $0x80] ss:$0 sps:$4 sm:$0xff]  }
  0x6e   : > { %v1311_v33 = vrot.slane %v1082_v7, 5  ;;  %v1312_v52 = vrot.slane %v1085_v44, 6  ;;  %3019 = vlog2.f32 %v212_v8  ;;  %v3753_v51 = vpack.c.bf16 %v3672_v58, %v3397_v43 }
  0x6f   : > { %v1088_v49 = vor.u32 %v1087_v14, %v1084_v30  ;;  %3021 = vlog2.f32 %v213_v36  ;;  %v1317_v44 = vrot.slane %v1315_v31, 5  ;;  %v1318_v38 = vrot.slane %v1091_v48, 6 }
  0x70   : > { %v1313_v7 = vor.u32 %v1312_v52, %v1311_v33  ;;  %v3767_v2 = vcombine.low %v3492_v47, %v3602_v42  ;;  %v3775_v48 = vcombine.low %v3553_v21, %v3634_v60  ;;  %v1558_v30 = vsel %vm465_vm0, %v2964_v61, 0  ;;  %v2966_v47 = vld [vmem:[%s4267_s1 + $0x6c] sm:$0xff]  }
  0x71   : > { %v1089_v24 = vrot.slane %v1088_v49, 4  ;;  %v1319_v1 = vor.u32 %v1318_v38, %v1317_v44  ;;  %v2450_v14 = vrot.slane %v3687_v50, 9  ;;  %v1203_v34 = vrot.slane %v3691_v55, 5  ;;  %v2965_v50 = vld [vmem:[%s4267_s1 + $0x60] sm:$0xff]  }
  0x72   : > { %2762 = vmatmul.mubr.msk.bf16.vlgmr.msra.gmra.mxu1 %vm452_vm1, %v3698_v15  ;;  %v1314_v43 = vrot.slane %v1313_v7, 4  ;;  %v1447_v60 = vsel %vm465_vm0, %v2963_v37, 0 }
  0x73   : > { %2782 = vmatpush3.bf16.msra.mxu1 %v1352_v9  ;;  %2765 = vmatprep.mubr.msk.bf16.mxu1 %vm452_vm1, %v3704_v6  ;;  %v3737_v28 = vsel %vm3299_vm4, %v1089_v24, %v1093_v41  ;;  %v3811_v49 = vsel %vm3496_vm10, %v2450_v14, %v1203_v34  ;;  %v2968_v41 = vld [vmem:[%s4267_s1 + $0x8c] ss:$0 sps:$4 sm:$0xff]  }
  0x74   : > { %2750 = vmatmul.mubr.msk.bf16.vlgmr.msra.gmra.mxu0 %vm452_vm1, %v3709_v4  ;;  %2783 = vmatprep.subr.bf16.mxu1 %v2962_v3  ;;  %v3744_v16 = vcombine.low %v3517_v26, %v3737_v28  ;;  %v2454_v26 = vcombine.low %v3544_v20, %v3531_v17  ;;  %v3771_v17 = vcombine.low %v3611_v62, %v3623_v54 }
  0x75   : > { %2770 = vmatpush3.bf16.msra.mxu0 %v1236_v59  ;;  %2753 = vmatprep.mubr.msk.bf16.mxu0 %vm452_vm1, %v3718_v32  ;;  %v3785_v62 = vsel %vm3467_vm9, %v1314_v43, %v1319_v1  ;;  %v3789_v54 = vcombine.low %v3647_v53, %v3663_v57 }
  0x76   : > { %2771 = vmatprep.subr.bf16.mxu0 %v2961_v19 }
  0x77   : > { %2784 = vmatpush3.bf16.msra.mxu1 %v2962_v3  ;;  %v3807_v3 = vcombine.low %v3643_v27, %v3785_v62 }
  0x78   : > { %2898 = vmatprep.subr.msk.bf16.mxu1 %vm465_vm0, %v2964_v61 }
  0x79   : > { %2772 = vmatpush3.bf16.msra.mxu0 %v2961_v19  ;;  %v3016_v20 = vpop.eup %3015 }
  0x7a   : > { %2766 = vmatmul.mubr.msk.bf16.gmra.mxu1 %vm452_vm1, %v3744_v16  ;;  %2897 = vmatprep.subr.msk.bf16.mxu0 %vm465_vm0, %v2963_v37  ;;  %v3018_v42 = vpop.eup %3017  ;;  %v3791_v21 = vmul.f32 0.6931472, %v3016_v20 }
  0x7b   : > { %2785 = vmatprep.mubr.msk.bf16.mxu1 %vm452_vm1, %v2467_v25  ;;  %v253_v55 = vmul.f32 0.6931472, %v3018_v42  ;;  %v3020_v9 = vpop.eup %3019  ;;  %v3829_v25 = vcombine.low %v3667_v35, %v3811_v49 }
  0x7c   : > { %2754 = vmatmul.mubr.msk.bf16.gmra.mxu0 %vm452_vm1, %v3753_v51  ;;  %v2595_v53 = vpack.c.bf16 %v3791_v21, %v3791_v21  ;;  %v3022_v57 = vpop.eup %3021  ;;  %v3816_v29 = vmul.f32 0.6931472, %v3020_v9 }
  0x7d   : > { %2773 = vmatprep.mubr.msk.bf16.mxu0 %vm452_vm1, %v2454_v26  ;;  %v2596_v46 = vpack.c.bf16 %v253_v55, %v253_v55  ;;  %v257_v19 = vmul.f32 0.6931472, %v3022_v57 }
  0x7e   : > { %v1526_v10 = vshrl.u32 %v2595_v53, 16  ;;  %v1529_v59 = vshll.u32 %v2595_v53, 16  ;;  %v2499_v27 = vrot.slane %v2595_v53, 9  ;;  %v3825_v36 = vpack.c.bf16 %v3816_v29, %v3816_v29 }
  0x7f   : > { %v1535_v24 = vshll.u32 %v2596_v46, 16  ;;  %v1735_v61 = vshrl.u32 %v2596_v46, 16  ;;  %v1635_v8 = vrot.slane %v2596_v46, 5  ;;  %v3836_v43 = vpack.c.bf16 %v257_v19, %v257_v19 }
  0x80   : > { %v1528_v33 = vrot.slane %v1526_v10, 4  ;;  %v1531_v52 = vrot.slane %v1529_v59, 5  ;;  %v1731_v31 = vrot.slane %v1526_v10, 5  ;;  %v1732_v37 = vrot.slane %v1529_v59, 6 }
  0x81   : > { %v1737_v26 = vrot.slane %v1735_v61, 5  ;;  %v1738_v7 = vrot.slane %v1535_v24, 6  ;;  %v3834_v44 = vsel %vm3496_vm10, %v2499_v27, %v1635_v8  ;;  %v1934_v35 = vshrl.u32 %v3825_v36, 16  ;;  %v2969_v8 = vld [vmem:[%s4267_s1 + $0x78] sm:$0xff]  }
  0x82   : > { %2786 = vmatmul.mubr.msk.bf16.vlgmr.msra.gmra.mxu1 %vm452_vm1, %v3767_v2  ;;  %v1733_v38 = vor.u32 %v1732_v37, %v1731_v31  ;;  %v1937_v20 = vshll.u32 %v3825_v36, 16  ;;  %v2143_v34 = vshrl.u32 %v3836_v43, 16  ;;  %v1537_v55 = vrot.slane %v1535_v24, 5 }
  0x83   : > { %2806 = vmatpush3.bf16.msra.mxu1 %v1558_v30  ;;  %2789 = vmatprep.mubr.msk.bf16.mxu1 %vm452_vm1, %v3771_v17  ;;  %v1739_v1 = vor.u32 %v1738_v7, %v1737_v26  ;;  %v1532_v30 = vor.u32 %v1531_v52, %v1528_v33  ;;  %v2542_v46 = vrot.slane %v3825_v36, 9  ;;  %v2043_v10 = vrot.slane %v3836_v43, 5  ;;  %v4315_v26 = vld [vmem:[#allocation7_spill] sm:$0xff] }
  0x84   : > { %2774 = vmatmul.mubr.msk.bf16.vlgmr.msra.gmra.mxu0 %vm452_vm1, %v3775_v48  ;;  %2807 = vmatprep.subr.bf16.mxu1 %v2966_v47  ;;  %v1734_v14 = vrot.slane %v1733_v38, 4  ;;  %v2140_v42 = vrot.slane %v1937_v20, 6  ;;  %v1760_v59 = vsel %vm465_vm0, %v2968_v41, 0  ;;  %v1656_v61 = vsel %vm465_vm0, %v2967_v56, 0  ;;  %v2973_v38 = vld [vmem:[%s4267_s1 + $0x90] sm:$0xff]  }
  0x85   : > { %2794 = vmatpush3.bf16.msra.mxu0 %v1447_v60  ;;  %2777 = vmatprep.mubr.msk.bf16.mxu0 %vm452_vm1, %v3789_v54  ;;  %v1533_v53 = vrot.slane %v1532_v30, 4  ;;  %v3869_v24 = vsel %vm3496_vm10, %v2542_v46, %v2043_v10  ;;  %v2594_v37 = vpack.c.bf16 %v3791_v21, %v3672_v58  ;;  %v2974_v58 = vld [vmem:[%s4267_s1 + $0x9c] sm:$0xff]   ;;  %v1855_v7 = vsel %vm465_vm0, %v2971_v63, 0 }
  0x86   : > { %2795 = vmatprep.subr.bf16.mxu0 %v2965_v50  ;;  %v3856_v60 = vsel %vm3467_vm9, %v1734_v14, %v1739_v1  ;;  %v1939_v1 = vrot.slane %v1937_v20, 5  ;;  %v2503_v30 = vcombine.low %v3811_v49, %v3834_v44  ;;  %v2977_v20 = vld [vmem:[%s4267_s1 + $0xa8] sm:$0xff]  }
  0x87   : > { %2808 = vmatpush3.bf16.msra.mxu1 %v2966_v47  ;;  %v2139_v47 = vrot.slane %v1934_v35, 5  ;;  %v1538_v22 = vsel %vm3299_vm4, %v1533_v53, %v1537_v55 }
  0x88   : > { %2900 = vmatprep.subr.msk.bf16.mxu1 %vm465_vm0, %v2968_v41  ;;  %v2546_v41 = vcombine.low %v3834_v44, %v3869_v24  ;;  %v2492_v31 = vcombine.low %v3737_v28, %v1538_v22 }
  0x89   : > { %2796 = vmatpush3.bf16.msra.mxu0 %v2965_v50  ;;  %v2145_v50 = vrot.slane %v2143_v34, 5  ;;  %v2141_v9 = vor.u32 %v2140_v42, %v2139_v47 }
  0x8a   : > { %2790 = vmatmul.mubr.msk.bf16.gmra.mxu1 %vm452_vm1, %v3807_v3  ;;  %2899 = vmatprep.subr.msk.bf16.mxu0 %vm465_vm0, %v2967_v56  ;;  %v2972_v56 = vld [vmem:[%s4267_s1 + $0xa4] ss:$0 sps:$4 sm:$0xff]  }
  0x8b   : > { %2809 = vmatprep.mubr.msk.bf16.mxu1 %vm452_vm1, %v3356_v12  ;;  %v1943_v12 = vshll.u32 %v3836_v43, 16  ;;  %v2142_v27 = vrot.slane %v2141_v9, 4  ;;  %v1966_v28 = vsel %vm465_vm0, %v2972_v56, 0  ;;  %v2597_v43 = vpack.c.bf16 %v3816_v29, %v3791_v21 }
  0x8c   : > { %2778 = vmatmul.mubr.msk.bf16.gmra.mxu0 %vm452_vm1, %v3829_v25 }
  0x8d   : > { %2797 = vmatprep.mubr.msk.bf16.mxu0 %vm452_vm1, %v3257_v5  ;;  %v2146_v57 = vrot.slane %v1943_v12, 6  ;;  %v2970_v5 = vld [vmem:[%s4267_s1 + $0x84] sm:$0xff]   ;;  %v1945_v49 = vrot.slane %v1943_v12, 5 }
  0x8f   : > { %v2147_v19 = vor.u32 %v2146_v57, %v2145_v50 }
  0x91   : > { %v3885_v33 = vsel %vm3467_vm9, %v2142_v27, %v2147_v19 }
  0x92   : > { %2810 = vmatmul.mubr.msk.bf16.vlgmr.msra.gmra.mxu1 %vm452_vm1, %v3502_v0  ;;  %v4313_v0 = vld [vmem:[#allocation5_spill] sm:$0xff]  ;;  %v2556_v52 = vcombine.low %v3856_v60, %v3885_v33 }
  0x93   : > { %2830 = vmatpush3.bf16.msra.mxu1 %v1760_v59  ;;  %2813 = vmatprep.mubr.msk.bf16.mxu1 %vm452_vm1, %v3535_v45  ;;  %v4314_v45 = vld [vmem:[#allocation6_spill] sm:$0xff] }
  0x94   : > { %2798 = vmatmul.mubr.msk.bf16.vlgmr.msra.gmra.mxu0 %vm452_vm1, %v4313_v0  ;;  %2831 = vmatprep.subr.bf16.mxu1 %v2970_v5 }
  0x95   : > { %2818 = vmatpush3.bf16.msra.mxu0 %v1656_v61  ;;  %2801 = vmatprep.mubr.msk.bf16.mxu0 %vm452_vm1, %v4314_v45 }
  0x96   : > { %2819 = vmatprep.subr.bf16.mxu0 %v2969_v8 }
  0x97   : > { %2832 = vmatpush3.bf16.msra.mxu1 %v2970_v5 }
  0x98   : > { %2902 = vmatprep.subr.msk.bf16.mxu1 %vm465_vm0, %v2972_v56 }
  0x99   : > { %2820 = vmatpush3.bf16.msra.mxu0 %v2969_v8 }
  0x9a   : > { %2814 = vmatmul.mubr.msk.bf16.gmra.mxu1 %vm452_vm1, %v2492_v31  ;;  %2901 = vmatprep.subr.msk.bf16.mxu0 %vm465_vm0, %v2971_v63 }
  0x9b   : > { %2833 = vmatprep.mubr.msk.bf16.mxu1 %vm452_vm1, %v4315_v26 }
  0x9c   : > { %2802 = vmatmul.mubr.msk.bf16.gmra.mxu0 %vm452_vm1, %v2594_v37 }
  0x9d   : > { %2821 = vmatprep.mubr.msk.bf16.mxu0 %vm452_vm1, %v3567_v11  ;;  %v2976_v11 = vld [vmem:[%s4267_s1 + $0xbc] ss:$0 sps:$4 sm:$0xff]  }
  0x9e   : > { %v2168_v36 = vsel %vm465_vm0, %v2976_v11, 0 }
  0xa2   : > { %2834 = vmatmul.mubr.msk.bf16.vlgmr.msra.gmra.mxu1 %vm452_vm1, %v3619_v13  ;;  %v2513_v13 = vcombine.low %v3785_v62, %v3856_v60 }
  0xa3   : > { %2854 = vmatpush3.bf16.msra.mxu1 %v1966_v28  ;;  %2837 = vmatprep.mubr.msk.bf16.mxu1 %vm452_vm1, %v3655_v18  ;;  %v2975_v18 = vld [vmem:[%s4267_s1 + $0xb0] ss:$0 sps:$4 sm:$0xff]  }
  0xa4   : > { %2822 = vmatmul.mubr.msk.bf16.vlgmr.msra.gmra.mxu0 %vm452_vm1, %v3659_v23  ;;  %2855 = vmatprep.subr.bf16.mxu1 %v2974_v58  ;;  %v1936_v23 = vrot.slane %v1934_v35, 4  ;;  %v2978_v35 = vld [vmem:[%s4267_s1 + $0xb4] sm:$0xff]  }
  0xa5   : > { %2842 = vmatpush3.bf16.msra.mxu0 %v1855_v7  ;;  %2825 = vmatprep.mubr.msk.bf16.mxu0 %vm452_vm1, %v3680_v39 }
  0xa6   : > { %2843 = vmatprep.subr.bf16.mxu0 %v2973_v38  ;;  %v1940_v39 = vor.u32 %v1939_v1, %v1936_v23 }
  0xa7   : > { %2856 = vmatpush3.bf16.msra.mxu1 %v2974_v58 }
  0xa8   : > { %2904 = vmatprep.subr.msk.bf16.mxu1 %vm465_vm0, %v2976_v11  ;;  %v1941_v62 = vrot.slane %v1940_v39, 4 }
  0xa9   : > { %2844 = vmatpush3.bf16.msra.mxu0 %v2973_v38 }
  0xaa   : > { %2838 = vmatmul.mubr.msk.bf16.gmra.mxu1 %vm452_vm1, %v2513_v13  ;;  %2903 = vmatprep.subr.msk.bf16.mxu0 %vm465_vm0, %v2975_v18 }
  0xab   : > { %2857 = vmatprep.mubr.msk.bf16.mxu1 %vm452_vm1, %v3698_v15  ;;  %v2064_v15 = vsel %vm465_vm0, %v2975_v18, 0 }
  0xac   : > { %2826 = vmatmul.mubr.msk.bf16.gmra.mxu0 %vm452_vm1, %v2503_v30 }
  0xad   : > { %2845 = vmatprep.mubr.msk.bf16.mxu0 %vm452_vm1, %v3709_v4  ;;  %v1946_v4 = vsel %vm3299_vm4, %v1941_v62, %v1945_v49 }
  0xb2   : > { %2858 = vmatmul.mubr.msk.bf16.vlgmr.msra.gmra.mxu1 %vm452_vm1, %v3704_v6  ;;  %v2535_v6 = vcombine.low %v1538_v22, %v1946_v4 }
  0xb3   : > { %2878 = vmatpush3.bf16.msra.mxu1 %v2168_v36  ;;  %2861 = vmatprep.mubr.msk.bf16.mxu1 %vm452_vm1, %v3744_v16 }
  0xb4   : > { %2846 = vmatmul.mubr.msk.bf16.vlgmr.msra.gmra.mxu0 %vm452_vm1, %v3718_v32  ;;  %2879 = vmatprep.subr.bf16.mxu1 %v2978_v35 }
  0xb5   : > { %2866 = vmatpush3.bf16.msra.mxu0 %v2064_v15  ;;  %2849 = vmatprep.mubr.msk.bf16.mxu0 %vm452_vm1, %v3753_v51 }
  0xb6   : > { %2867 = vmatprep.subr.bf16.mxu0 %v2977_v20 }
  0xb7   : > { %2880 = vmatpush3.bf16.msra.mxu1 %v2978_v35 }
  0xb9   : > { %2868 = vmatpush3.bf16.msra.mxu0 %v2977_v20 }
  0xba   : > { %2862 = vmatmul.mubr.msk.bf16.gmra.mxu1 %vm452_vm1, %v2535_v6 }
  0xbb   : > { %2881 = vmatprep.mubr.msk.bf16.mxu1 %vm452_vm1, %v3767_v2 }
  0xbc   : > { %2850 = vmatmul.mubr.msk.bf16.gmra.mxu0 %vm452_vm1, %v2597_v43 }
  0xbd   : > { %2869 = vmatprep.mubr.msk.bf16.mxu0 %vm452_vm1, %v3775_v48 }
  0xc2   : > { %2882 = vmatmul.mubr.msk.bf16.vlgmr.msra.gmra.mxu1 %vm452_vm1, %v3771_v17 }
  0xc3   : > { %2885 = vmatprep.mubr.msk.bf16.mxu1 %vm452_vm1, %v3807_v3 }
  0xc4   : > { %2870 = vmatmul.mubr.msk.bf16.vlgmr.msra.gmra.mxu0 %vm452_vm1, %v3789_v54 }
  0xc5   : > { %2873 = vmatprep.mubr.msk.bf16.mxu0 %vm452_vm1, %v3829_v25 }
  0xca   : > { %2886 = vmatmul.mubr.msk.bf16.gmra.mxu1 %vm452_vm1, %v2556_v52 }
  0xcc   : > { %2874 = vmatmul.mubr.msk.bf16.gmra.mxu0 %vm452_vm1, %v2546_v41 }
  0xf3   : > { %v2715_v40 = vpop.f32.mrf.mxu1 }
  0xf5   : > { %v596_v32 = vpop.f32.mrf.mxu1 }
  0xf7   : > { %v2716_v16 = vpop.f32.mrf.mxu1 }
  0xf9   : > { %v599_v54 = vpop.f32.mrf.mxu1 }
 0x104   : > { %v2703_v51 = vpop.f32.mrf.mxu0 }
 0x105   : > { %v605_v2 = vadd.f32 %v2715_v40, %v2703_v51 }
 0x106   : > { %v503_v17 = vpop.f32.mrf.mxu0 }
 0x107   : > { %v597_v48 = vadd.f32 %v596_v32, %v503_v17 }
 0x108   : > { %v2704_v21 = vpop.f32.mrf.mxu0 }
 0x109   : > { %v608_v3 = vadd.f32 %v2716_v16, %v2704_v21  ;;  %v2719_v25 = vpop.f32.mrf.mxu1 }
 0x10a   : > { %v506_v29 = vpop.f32.mrf.mxu0 }
 0x10b   : > { %v600_v14 = vadd.f32 %v599_v54, %v506_v29  ;;  %v612_v34 = vpop.f32.mrf.mxu1 }
 0x10d   : > { %v2720_v47 = vpop.f32.mrf.mxu1 }
 0x10f   : > { %v615_v42 = vpop.f32.mrf.mxu1 }
 0x117   : > { %v2707_v60 = vpop.f32.mrf.mxu0 }
 0x118   : > { %v621_v44 = vadd.f32 %v2719_v25, %v2707_v60  ;;  %v2739_v12 = vpop.f32.mrf.mxu1 }
 0x119   : > { %v519_v50 = vpop.f32.mrf.mxu0 }
 0x11a   : > { %v613_v55 = vadd.f32 %v612_v34, %v519_v50  ;;  %v932_v9 = vpop.f32.mrf.mxu1 }
 0x11b   : > { %v2708_v53 = vpop.f32.mrf.mxu0 }
 0x11c   : > { %v624_v57 = vadd.f32 %v2720_v47, %v2708_v53  ;;  %v2740_v10 = vpop.f32.mrf.mxu1 }
 0x11d   : > { %v522_v46 = vpop.f32.mrf.mxu0 }
 0x11e   : > { %v616_v59 = vadd.f32 %v615_v42, %v522_v46  ;;  %v935_v24 = vpop.f32.mrf.mxu1 }
 0x11f   : > { %v2727_v5 = vpop.f32.mrf.mxu0 }
 0x120   : > { %v769_v27 = vadd.f32 %v2727_v5, %v605_v2 }
 0x121   : > { %v736_v19 = vpop.f32.mrf.mxu0 }
 0x122   : > { %v767_v61 = vadd.f32 %v736_v19, %v597_v48  ;;  %v3992_v8 = vadd.f32 %v2739_v12, %v769_v27 }
 0x123   : > { %v2728_v41 = vpop.f32.mrf.mxu0 }
 0x124   : > { %v770_v22 = vadd.f32 %v2728_v41, %v608_v3  ;;  %v3994_v33 = vadd.f32 %v932_v9, %v767_v61 }
 0x125   : > { %v739_v56 = vpop.f32.mrf.mxu0 }
 0x126   : > { %v768_v52 = vadd.f32 %v739_v56, %v600_v14  ;;  %v3996_v45 = vadd.f32 %v2740_v10, %v770_v22 }
 0x128   : > { %v3998_v26 = vadd.f32 %v935_v24, %v768_v52 }
 0x12a   : > { %v2743_v0 = vpop.f32.mrf.mxu1 }
 0x12b   : > { %v2731_v63 = vpop.f32.mrf.mxu0 }
 0x12c   : > { %v948_v31 = vpop.f32.mrf.mxu1  ;;  %v773_v37 = vadd.f32 %v2731_v63, %v621_v44 }
 0x12d   : > { %v752_v58 = vpop.f32.mrf.mxu0 }
 0x12e   : > { %v2744_v28 = vpop.f32.mrf.mxu1  ;;  %v771_v7 = vadd.f32 %v752_v58, %v613_v55  ;;  %v4000_v38 = vadd.f32 %v2743_v0, %v773_v37 }
 0x12f   : > { %v2732_v13 = vpop.f32.mrf.mxu0 }
 0x130   : > { %v951_v11 = vpop.f32.mrf.mxu1  ;;  %v774_v18 = vadd.f32 %v2732_v13, %v624_v57  ;;  %v4002_v23 = vadd.f32 %v948_v31, %v771_v7 }
 0x131   : > { %v755_v30 = vpop.f32.mrf.mxu0 }
 0x132   : > { %v4004_v1 = vpop.f32.mrf.mxu1  ;;  %v772_v39 = vadd.f32 %v755_v30, %v616_v59  ;;  %v4006_v62 = vadd.f32 %v2744_v28, %v774_v18 }
 0x134   : > { %v4008_v49 = vpop.f32.mrf.mxu1  ;;  %v2751_v36 = vpop.f32.mrf.mxu0  ;;  %v4010_v35 = vadd.f32 %v951_v11, %v772_v39 }
 0x135   : > { %v1072_v18 = vadd.f32 %v2751_v36, %v3992_v8 }
 0x136   : > { %v4012_v15 = vpop.f32.mrf.mxu1  ;;  %v1039_v20 = vpop.f32.mrf.mxu0 }
 0x138   : > { %v4014_v4 = vpop.f32.mrf.mxu1  ;;  %v2752_v6 = vpop.f32.mrf.mxu0 }
 0x13a   : > { %v4016_v43 = vpop.f32.mrf.mxu1  ;;  %v1042_v40 = vpop.f32.mrf.mxu0 }
 0x13c   : > { %v4018_v32 = vpop.f32.mrf.mxu1  ;;  %v2755_v16 = vpop.f32.mrf.mxu0 }
 0x13e   : > { %v4020_v51 = vpop.f32.mrf.mxu1  ;;  %v1055_v2 = vpop.f32.mrf.mxu0 }
 0x140   : > { %v4022_v17 = vpop.f32.mrf.mxu1  ;;  %v4024_v48 = vpop.f32.mrf.mxu0 }
 0x142   : > { %v2787_v54 = vpop.f32.mrf.mxu1  ;;  %v4026_v21 = vpop.f32.mrf.mxu0 }
 0x144   : > { %v4028_v3 = vpop.f32.mrf.mxu1  ;;  %v2775_v29 = vpop.f32.mrf.mxu0 }
 0x146   : > { %v4030_v25 = vpop.f32.mrf.mxu1  ;;  %v1272_v14 = vpop.f32.mrf.mxu0 }
 0x148   : > { %v4032_v34 = vpop.f32.mrf.mxu1  ;;  %v2776_v47 = vpop.f32.mrf.mxu0 }
 0x14a   : > { %v4034_v42 = vpop.f32.mrf.mxu1  ;;  %v1275_v60 = vpop.f32.mrf.mxu0 }
 0x14c   : > { %v4036_v44 = vpop.f32.mrf.mxu1  ;;  %v2779_v12 = vpop.f32.mrf.mxu0 }
 0x14e   : > { %v4038_v50 = vpop.f32.mrf.mxu1  ;;  %v4040_v55 = vpop.f32.mrf.mxu0 }
 0x150   : > { %v4042_v9 = vpop.f32.mrf.mxu1  ;;  %v4044_v53 = vpop.f32.mrf.mxu0 }
 0x151   : > { %4316 = vst [vmem:[#allocation5_spill] sm:$0xff] %v4042_v9 }
 0x152   : > { %v4046_v57 = vpop.f32.mrf.mxu1  ;;  %v4048_v46 = vpop.f32.mrf.mxu0 }
 0x154   : > { %v4050_v10 = vpop.f32.mrf.mxu1  ;;  %v2799_v59 = vpop.f32.mrf.mxu0 }
 0x156   : > { %v4052_v5 = vpop.f32.mrf.mxu1  ;;  %v1483_v27 = vpop.f32.mrf.mxu0 }
 0x158   : > { %v4054_v19 = vpop.f32.mrf.mxu1  ;;  %v2800_v24 = vpop.f32.mrf.mxu0 }
 0x15a   : > { %v4056_v61 = vpop.f32.mrf.mxu1  ;;  %v4058_v41 = vpop.f32.mrf.mxu0 }
 0x15b   : > { %4317 = vst [vmem:[#allocation6_spill] sm:$0xff] %v4056_v61  ;;  %v1073_v61 = vadd.f32 %v2752_v6, %v3996_v45 }
 0x15c   : > { %v4060_v22 = vpop.f32.mrf.mxu1  ;;  %v4062_v0 = vpop.f32.mrf.mxu0 }
 0x15d   : > { %4318 = vst [vmem:[#allocation7_spill] sm:$0xff] %v4060_v22  ;;  %v1196_v45 = vadd.f32 %v4012_v15, %v1073_v61 }
 0x15e   : > { %v4064_v56 = vpop.f32.mrf.mxu1  ;;  %v4066_v52 = vpop.f32.mrf.mxu0 }
 0x15f   : > { %4319 = vst [vmem:[#allocation8_spill] sm:$0xff] %v4064_v56  ;;  %v1070_v56 = vadd.f32 %v1039_v20, %v3994_v33 }
 0x160   : > { %v4068_v31 = vpop.f32.mrf.mxu1  ;;  %v4070_v63 = vpop.f32.mrf.mxu0 }
 0x161   : > { %4320 = vst [vmem:[#allocation9_spill] sm:$0xff] %v4068_v31  ;;  %v1193_v36 = vadd.f32 %v4008_v49, %v1070_v56 }
 0x162   : > { %v4072_v37 = vpop.f32.mrf.mxu1  ;;  %v4074_v28 = vpop.f32.mrf.mxu0 }
 0x163   : > { %4321 = vst [vmem:[#allocation10_spill] sm:$0xff] %v4074_v28  ;;  %v1195_v28 = vadd.f32 %v4004_v1, %v1072_v18  ;;  %v1074_v1 = vadd.f32 %v1055_v2, %v4002_v23  ;;  %v1075_v2 = vadd.f32 %v4026_v21, %v4010_v35 }
 0x164   : > { %v4076_v58 = vpop.f32.mrf.mxu1  ;;  %v2823_v7 = vpop.f32.mrf.mxu0 }
 0x165   : > { %4322 = vst [vmem:[#allocation11_spill] sm:$0xff] %v4076_v58  ;;  %v1305_v8 = vadd.f32 %v2775_v29, %v1195_v28  ;;  %v1198_v21 = vadd.f32 %v4022_v17, %v1075_v2 }
 0x166   : > { %v4078_v11 = vpop.f32.mrf.mxu1  ;;  %v1692_v13 = vpop.f32.mrf.mxu0 }
 0x167   : > { %4323 = vst [vmem:[#allocation12_spill] sm:$0xff] %v4078_v11  ;;  %v1071_v11 = vadd.f32 %v1042_v40, %v3998_v26  ;;  %v1421_v40 = vadd.f32 %v2787_v54, %v1305_v8  ;;  %v4327_v8 = vld [vmem:[#allocation5_spill] sm:$0xff] }
 0x168   : > { %v4081_v30 = vpop.f32.mrf.mxu1  ;;  %v2824_v39 = vpop.f32.mrf.mxu0 }
 0x169   : > { %4324 = vst [vmem:[#allocation13_spill] sm:$0xff] %v4081_v30  ;;  %v1076_v30 = vadd.f32 %v2755_v16, %v4000_v38  ;;  %v1194_v26 = vadd.f32 %v4014_v4, %v1071_v11  ;;  %v1077_v38 = vadd.f32 %v4024_v48, %v4006_v62  ;;  %v1197_v4 = vadd.f32 %v4018_v32, %v1074_v1 }
 0x16a   : > { %v4084_v31 = vpop.f32.mrf.mxu1  ;;  %v4086_v22 = vpop.f32.mrf.mxu0 }
 0x16b   : > { %4325 = vst [vmem:[#allocation14_spill] sm:$0xff] %v4084_v31  ;;  %v1303_v31 = vadd.f32 %v1272_v14, %v1193_v36  ;;  %v1199_v49 = vadd.f32 %v4016_v43, %v1076_v30  ;;  %v1304_v15 = vadd.f32 %v1275_v60, %v1194_v26  ;;  %v1516_v14 = vadd.f32 %v2799_v59, %v1421_v40 }
 0x16c   : > { %v4090_v58 = vpop.f32.mrf.mxu1  ;;  %v4092_v9 = vpop.f32.mrf.mxu0  ;;  %v1307_v48 = vadd.f32 %v4040_v55, %v1197_v4  ;;  %v1200_v56 = vadd.f32 %v4020_v51, %v1077_v38  ;;  %v4329_v26 = vld [vmem:[#allocation11_spill] sm:$0xff]  ;;  %v4333_v4 = vld [vmem:[#allocation8_spill] sm:$0xff] }
 0x16d   : > { %4326 = vst [vmem:[#allocation15_spill] sm:$0xff] %v4090_v58  ;;  %v1306_v58 = vadd.f32 %v2776_v47, %v1196_v45  ;;  %v1419_v23 = vadd.f32 %v4028_v3, %v1303_v31  ;;  %v1309_v47 = vadd.f32 %v2779_v12, %v1199_v49  ;;  %v1420_v31 = vadd.f32 %v4032_v34, %v1304_v15  ;;  %v4328_v45 = vld [vmem:[#allocation6_spill] sm:$0xff] }
 0x16e   : > { %v4097_v33 = vpop.f32.mrf.mxu1  ;;  %v4099_v20 = vpop.f32.mrf.mxu0  ;;  %v1627_v35 = vadd.f32 %v4046_v57, %v1516_v14  ;;  %v1310_v32 = vadd.f32 %v4044_v53, %v1200_v56  ;;  %v1423_v57 = vadd.f32 %v4036_v44, %v1307_v48 }
 0x16f   : > { %v1514_v62 = vadd.f32 %v1483_v27, %v1419_v23  ;;  %v1422_v43 = vadd.f32 %v4030_v25, %v1306_v58  ;;  %v1425_v12 = vadd.f32 %v4034_v42, %v1309_v47  ;;  %v1515_v55 = vadd.f32 %v4058_v41, %v1420_v31  ;;  %v4332_v23 = vld [vmem:[#allocation12_spill] sm:$0xff]  ;;  %v4335_v31 = vld [vmem:[#allocation9_spill] sm:$0xff] }
 0x170   : > { %v4103_v6 = vpop.f32.mrf.mxu1  ;;  %v4105_v18 = vpop.f32.mrf.mxu0  ;;  %v1725_v51 = vadd.f32 %v2823_v7, %v1627_v35  ;;  %v1518_v11 = vadd.f32 %v4066_v52, %v1423_v57  ;;  %v1426_v30 = vadd.f32 %v4038_v50, %v1310_v32  ;;  %v4334_v48 = vld [vmem:[#allocation13_spill] sm:$0xff] }
 0x171   : > { %v1517_v3 = vadd.f32 %v2800_v24, %v1422_v43  ;;  %v1625_v28 = vadd.f32 %v4050_v10, %v1514_v62  ;;  %v1308_v24 = vadd.f32 %v4048_v46, %v1198_v21  ;;  %v1520_v34 = vadd.f32 %v4062_v0, %v1425_v12 }
 0x172   : > { %v4111_v16 = vpop.f32.mrf.mxu1  ;;  %v4113_v29 = vpop.f32.mrf.mxu0  ;;  %v1626_v46 = vadd.f32 %v4054_v19, %v1515_v55  ;;  %v1829_v0 = vadd.f32 %v4072_v37, %v1725_v51  ;;  %v1521_v44 = vadd.f32 %v4070_v63, %v1426_v30  ;;  %v4331_v37 = vld [vmem:[#allocation7_spill] sm:$0xff] }
 0x173   : > { %v1723_v17 = vadd.f32 %v1692_v13, %v1625_v28  ;;  %v1628_v42 = vadd.f32 %v4052_v5, %v1517_v3  ;;  %v1424_v36 = vadd.f32 %v4327_v8, %v1308_v24  ;;  %v1631_v13 = vadd.f32 %v4328_v45, %v1520_v34 }
 0x174   : > { %v4119_v54 = vpop.f32.mrf.mxu1  ;;  %v2847_v61 = vpop.f32.mrf.mxu0  ;;  %v1724_v50 = vadd.f32 %v4086_v22, %v1626_v46  ;;  %v1629_v49 = vadd.f32 %v4331_v37, %v1518_v11  ;;  %v1632_v22 = vadd.f32 %v4333_v4, %v1521_v44  ;;  %v4337_v24 = vld [vmem:[#allocation15_spill] sm:$0xff] }
 0x175   : > { %v1726_v10 = vadd.f32 %v2824_v39, %v1628_v42  ;;  %v1924_v52 = vadd.f32 %v2847_v61, %v1829_v0  ;;  %v1827_v40 = vadd.f32 %v4329_v26, %v1723_v17  ;;  %v4330_v39 = vld [vmem:[#allocation10_spill] sm:$0xff]  ;;  %v1729_v19 = vadd.f32 %v4092_v9, %v1631_v13  ;;  %v2249_v37 = vld [vmem:[%s4268_s2 + $0x30] sm:$0xff] }
 0x176   : > { %v4124_v60 = vpop.f32.mrf.mxu1  ;;  %v1891_v59 = vpop.f32.mrf.mxu0  ;;  %v1519_v38 = vadd.f32 %v4330_v39, %v1424_v36  ;;  %v1727_v47 = vadd.f32 %v4099_v20, %v1629_v49  ;;  %v1828_v56 = vadd.f32 %v4334_v48, %v1724_v50  ;;  %v1730_v3 = vadd.f32 %v4105_v18, %v1632_v22  ;;  %v2245_v18 = vld [vmem:[%s4268_s2 + $0x10] sm:$0xff]  ;;  %v2250_v48 = vld [vmem:[%s4268_s2 + $0x38] sm:$0xff] }
 0x177   : > { %v1922_v14 = vadd.f32 %v1891_v59, %v1827_v40  ;;  %v1830_v2 = vadd.f32 %v4332_v23, %v1726_v10  ;;  %v2035_v9 = vadd.f32 %v4111_v16, %v1924_v52  ;;  %v4336_v59 = vld [vmem:[#allocation14_spill] sm:$0xff] }
 0x178   : > { %v4131_v27 = vpop.f32.mrf.mxu1  ;;  %v2848_v25 = vpop.f32.mrf.mxu0  ;;  %v1630_v35 = vadd.f32 %v4335_v31, %v1519_v38  ;;  %v1833_v32 = vadd.f32 %v4336_v59, %v1729_v19  ;;  %v1831_v34 = vadd.f32 %v4337_v24, %v1727_v47  ;;  %v1834_v30 = vadd.f32 %v4097_v33, %v1730_v3  ;;  %v2247_v47 = vld [vmem:[%s4268_s2 + $0x20] sm:$0xff] }
 0x179   : > { %v1925_v43 = vadd.f32 %v2848_v25, %v1830_v2  ;;  %v2033_v51 = vadd.f32 %v4119_v54, %v1922_v14 }
 0x17a   : > { %v4138_v58 = vpop.f32.mrf.mxu1  ;;  %v1894_v53 = vpop.f32.mrf.mxu0  ;;  %v1728_v25 = vadd.f32 %v4113_v29, %v1630_v35  ;;  %v2243_v29 = vld [vmem:[%s4268_s2] sm:$0xff] }
 0x17b   : > { %v1923_v55 = vadd.f32 %v1894_v53, %v1828_v56  ;;  %v2036_v53 = vadd.f32 %v4124_v60, %v1925_v43  ;;  %v2246_v60 = vld [vmem:[%s4268_s2 + $0x18] sm:$0xff] }
 0x17c   : > { %v4143_v41 = vpop.f32.mrf.mxu1  ;;  %v2851_v7 = vpop.f32.mrf.mxu0  ;;  %v1832_v8 = vadd.f32 %v4103_v6, %v1728_v25  ;;  %v2244_v6 = vld [vmem:[%s4268_s2 + $0x8] sm:$0xff] }
 0x17d   : > { %v1928_v28 = vadd.f32 %v2851_v7, %v1833_v32  ;;  %v2034_v44 = vadd.f32 %v4131_v27, %v1923_v55 }
 0x17e   : > { %v4150_v1 = vpop.f32.mrf.mxu1  ;;  %v1907_v5 = vpop.f32.mrf.mxu0 }
 0x17f   : > { %v1926_v11 = vadd.f32 %v1907_v5, %v1831_v34  ;;  %v2039_v33 = vadd.f32 %v4138_v58, %v1928_v28 }
 0x180   : > { %v4157_v63 = vpop.f32.mrf.mxu1  ;;  %v2852_v15 = vpop.f32.mrf.mxu0 }
 0x181   : > { %v1929_v13 = vadd.f32 %v2852_v15, %v1834_v30  ;;  %v2037_v40 = vadd.f32 %v4143_v41, %v1926_v11 }
 0x182   : > { %v2883_v61 = vpop.f32.mrf.mxu1  ;;  %v1910_v62 = vpop.f32.mrf.mxu0 }
 0x183   : > { %v1927_v58 = vadd.f32 %v1910_v62, %v1832_v8  ;;  %v2040_v2 = vadd.f32 %v4150_v1, %v1929_v13 }
 0x184   : > { %v2204_v21 = vpop.f32.mrf.mxu1  ;;  %v2871_v12 = vpop.f32.mrf.mxu0 }
 0x185   : > { %v2133_v20 = vadd.f32 %v2871_v12, %v2035_v9  ;;  %v2038_v43 = vadd.f32 %v4157_v63, %v1927_v58  ;;  %v2248_v63 = vld [vmem:[%s4268_s2 + $0x28] sm:$0xff] }
 0x186   : > { %v2884_v16 = vpop.f32.mrf.mxu1  ;;  %v2100_v57 = vpop.f32.mrf.mxu0 }
 0x187   : > { %v2237_v17 = vadd.f32 %v2883_v61, %v2133_v20  ;;  %v2131_v42 = vadd.f32 %v2100_v57, %v2033_v51 }
 0x188   : > { %v2207_v54 = vpop.f32.mrf.mxu1  ;;  %v2872_v7 = vpop.f32.mrf.mxu0 }
 0x189   : > { %v2253_v10 = vadd.f32 %v2245_v18, %v2237_v17  ;;  %v2235_v46 = vadd.f32 %v2204_v21, %v2131_v42  ;;  %v2134_v0 = vadd.f32 %v2872_v7, %v2036_v53 }
 0x18a   : > { %v2887_v36 = vpop.f32.mrf.mxu1  ;;  %v2103_v45 = vpop.f32.mrf.mxu0 }
 0x18b   : > { %2261 = vst [vmem:[%s4187_s29 + $0x10] sm:$0xff] %v2253_v10  ;;  %v2251_v5 = vadd.f32 %v2243_v29, %v2235_v46  ;;  %v2238_v50 = vadd.f32 %v2884_v16, %v2134_v0  ;;  %v2132_v27 = vadd.f32 %v2103_v45, %v2034_v44 }
 0x18c   : > { %v2220_v52 = vpop.f32.mrf.mxu1  ;;  %v2875_v26 = vpop.f32.mrf.mxu0 }
 0x18d   : > { %2259 = vst [vmem:[%s4187_s29] sm:$0xff] %v2251_v5  ;;  %v2254_v39 = vadd.f32 %v2246_v60, %v2238_v50  ;;  %v2236_v38 = vadd.f32 %v2207_v54, %v2132_v27  ;;  %v2137_v19 = vadd.f32 %v2875_v26, %v2039_v33 }
 0x18e   : > { %v2116_v49 = vpop.f32.mrf.mxu0  ;;  %v2888_v41 = vpop.f32.mrf.mxu1 }
 0x18f   : > { %2262 = vst [vmem:[%s4187_s29 + $0x18] sm:$0xff] %v2254_v39  ;;  %v2252_v15 = vadd.f32 %v2244_v6, %v2236_v38  ;;  %v2241_v14 = vadd.f32 %v2887_v36, %v2137_v19  ;;  %v2135_v23 = vadd.f32 %v2116_v49, %v2037_v40 }
 0x190   : > { %v2876_v4 = vpop.f32.mrf.mxu0  ;;  %v2223_v31 = vpop.f32.mrf.mxu1 }
 0x191   : > { %2260 = vst [vmem:[%s4187_s29 + $0x8] sm:$0xff] %v2252_v15  ;;  %v2257_v22 = vadd.f32 %v2249_v37, %v2241_v14  ;;  %v2239_v61 = vadd.f32 %v2220_v52, %v2135_v23  ;;  %v2138_v62 = vadd.f32 %v2876_v4, %v2040_v2 }
 0x192   : > { %v2119_v1 = vpop.f32.mrf.mxu0 }
 0x193   : > { %2265 = vst [vmem:[%s4187_s29 + $0x30] sm:$0xff] %v2257_v22  ;;  %v2255_v56 = vadd.f32 %v2247_v47, %v2239_v61  ;;  %v2242_v9 = vadd.f32 %v2888_v41, %v2138_v62  ;;  %v2136_v3 = vadd.f32 %v2119_v1, %v2038_v43 }
 0x195   : > { %2263 = vst [vmem:[%s4187_s29 + $0x20] sm:$0xff] %v2255_v56  ;;  %v2258_v35 = vadd.f32 %v2250_v48, %v2242_v9  ;;  %v2240_v59 = vadd.f32 %v2223_v31, %v2136_v3 }
 0x197   : > { %2266 = vst [vmem:[%s4187_s29 + $0x38] sm:$0xff] %v2258_v35  ;;  %v2256_v32 = vadd.f32 %v2248_v63, %v2240_v59 }
 0x199   : > { %2264 = vst [vmem:[%s4187_s29 + $0x28] sm:$0xff] %v2256_v32 }
 0x19a   : > { %3036 = shalt.err (!%p3033_p3)
}
 0x19b   : > { %s3037_s17 = scalar_lea.hbm %s4218_s27, 1024  ;;  %s3041_s7 = scalar_lea.hbm %s4269_s3, 2048 }
 0x19c   : > { %p3038_p4 = scmp.ne.s32.totalorder %s4218_s27, %s3037_s17  ;;  %p3042_p9 = scmp.lt.s32.totalorder %s4218_s27, %s4269_s3 }
 0x19d   : > { %p3043_p10 = scmp.lt.s32.totalorder %s3041_s7, %s3037_s17 }
 0x19e   : > { %p3039_p7 = pnand %p3038_p4, %p3146_p5 }
 0x19f   : > { %p3044_p11 = por %p3043_p10, %p3042_p9 }
 0x1a0   : > { %p3040_p8 = pneg %p3039_p7 }
 0x1a2   : > { %p3045_p12 = pnand %p3044_p11, %p3040_p8 }
 0x1a4   : > { %3048 = shalt.err (!%p3045_p12)
}
 0x1a5   : > { %s3086_s10 = smov 128   ;;  %s3087_s11 = smov 8  }
 0x1a6   : > { %2906 = dma.vmem_to_hbm [thread:$0]  (%p3146_p5), %s4220_s20, 1024, %s4218_s27, %s4226_s16, %s3086_s10, %s3086_s10, %s3087_s11  }
 0x1a7 PF: > { %p2912_p13 = scmp.ge.s32.totalorder %s3083_s15, 2  ;;  %s2296_s24 = sand.u32 1, %s3071_s12  }
 0x1a8   : > { %s2297_s25 = scalar_lea.sflag [#allocation3], %s2296_s24 }
 0x1a9   : > { %p2909_p0 = pnand %p2912_p13, %p3150_p6 }
 0x1ab   : > { %p2910_p1 = pneg %p2909_p0 }
 0x1ad   : > { %3066 = dma.done.wait (%p2910_p1), %s2297_s25, 1024  }
 0x1ae   : > { %3068 = vsyncadd (%p2910_p1), %s2297_s25, 4294966272  ;;  %p13_p2 = scmp.ge.s32.totalorder %s3133_s18, 4   ;;  %s4338_s12 = smov %s3075_s13 }
 0x1af   : > { %s4339_s13 = smov %s3079_s14  ;;  %s4340_s14 = smov %s3144_s21 }
 0x1b0   : > { %s4341_s15 = smov %s3133_s18  ;;  %15 = sbr.rel (!%p13_p2) target bundleno = 3 (0x3), region = 82 }
 0x1b5   :  { %2302 = vsyncpa [#allocation3], 1 }
 0x1b6   :  { %2304 = vsyncpa [#allocation3 + $0x1], 1 }

</bundles_post_ra>
